<compile_context>
chip_gen: v7x
topology: tpu7x:2x2x1
jax: 0.10.0
libtpu: 0.0.40
codegen_flags: <defaults>
</compile_context>

<pallas_src>
import functools

import jax
import jax.numpy as jnp
from jax import lax
from jax.experimental import pallas as pl
from jax.experimental.pallas import tpu as pltpu

NEG_SLOPE = 0.01
EPS = 1e-5


def _vmem_capacity_bytes():
    try:
        return int(pltpu.get_tpu_info().vmem_capacity_bytes)
    except Exception:
        return 64 * 1024 * 1024  # conservative (v7x)


def _pick_depth_block(d, per_depth_bytes, budget_bytes):
    db = 1
    for cand in range(1, d + 1):
        if d % cand == 0 and cand * per_depth_bytes <= budget_bytes:
            db = cand
    return db


# ---------------------------------------------------------------------------
# Pass 1: conv (1,3,3)/(1,2,2)/(0,1,1) + bias, plus per-channel sum / sumsq
# accumulated over the depth-block grid axis (full-sample InstanceNorm stats).
# ---------------------------------------------------------------------------
def _conv_stats_kernel(x_ref, w_ref, b_ref, m_ref, y_ref, s_ref, q_ref,
                       *, wq, L, cin, fold):
    # x_ref: (4, Cin, L+tail)  parity planes, db depth slices flattened on lanes
    # w_ref: (Cout, 9*Cin)     b_ref: (Cout, 1)    m_ref: (1, L) valid-position mask
    # y_ref: (Cout, L) bf16    s_ref/q_ref: (Cout, 1) resident f32 accumulators
    @pl.when(pl.program_id(1) == 0)
    def _():
        s_ref[...] = jnp.zeros_like(s_ref)
        q_ref[...] = jnp.zeros_like(q_ref)

    taps = [((kh % 2) * 2 + (kw % 2), (kh // 2) * wq + (kw // 2), kh * 3 + kw)
            for kh in range(3) for kw in range(3)]

    if fold:
        # one K = 9*Cin dot: fills the MXU contraction dim when Cin is small
        stacked = jnp.concatenate(
            [x_ref[pi, :, s:s + L] for pi, s, _ in taps], axis=0)     # (9*Cin, L)
        acc = jnp.dot(w_ref[...], stacked, preferred_element_type=jnp.float32)
    else:
        acc = jnp.zeros((w_ref.shape[0], L), jnp.float32)
        for pi, s, t in taps:
            acc = acc + jnp.dot(w_ref[:, t * cin:(t + 1) * cin],
                                x_ref[pi, :, s:s + L],
                                preferred_element_type=jnp.float32)

    acc = acc + b_ref[...]                                            # bias
    y_ref[...] = acc.astype(y_ref.dtype)                              # bf16 intermediate

    masked = acc * m_ref[...]                                         # drop halo / junk lanes
    s_ref[...] += jnp.sum(masked, axis=1, keepdims=True)
    q_ref[...] += jnp.sum(masked * acc, axis=1, keepdims=True)


# ---------------------------------------------------------------------------
# Pass 2: InstanceNorm (precomputed per-(n,c) scale/shift) + LeakyReLU(0.01);
# writes the final (n, cout, d, ho, wo) tensor directly (transpose via out_spec).
# ---------------------------------------------------------------------------
def _norm_lrelu_kernel(y_ref, sc_ref, sh_ref, o_ref):
    # y_ref: (Cout, db, ho, wo) bf16; sc/sh: (Cout,1,1,1) f32; o_ref: (Cout, db, ho, wo)
    z = y_ref[...].astype(jnp.float32) * sc_ref[...] + sh_ref[...]
    o_ref[...] = jnp.where(z >= 0, z, NEG_SLOPE * z).astype(o_ref.dtype)


# ---------------------------------------------------------------------------
# Wrapper
# ---------------------------------------------------------------------------
def down_pallas(x, params):
    w9, b = params["w"], params["b"]                 # (9, Cout, Cin), (Cout,)
    gamma, beta = params["gamma"], params["beta"]    # (Cout,), (Cout,)

    n, cin, d, h, w = x.shape
    cout = w9.shape[1]
    ho = (h - 1) // 2 + 1
    wo = (w - 1) // 2 + 1
    wq = wo + 1                                      # plane width  (incl. halo col)
    hq2 = ho + 3                                     # plane height (halo row + shift slack)
    p_seg = hq2 * wq                                 # lanes per depth slice (incl. junk)
    tail = wq + 1                                    # slack so the largest tap shift is in-bounds

    fold = (9 * cin) <= 256
    # per-depth VMEM bytes: double-buffered x / y blocks + in-kernel temps
    per_depth = 2 * (4 * cin * 4 + cout * 2) * p_seg
    per_depth += ((9 * cin * 4 if fold else 0) + 2 * cout * 4) * p_seg
    cap = _vmem_capacity_bytes()
    db = _pick_depth_block(d, per_depth, (3 * cap) // 8)   # ~24 MiB on v7x, ~48 MiB v5e/v6e
    nb = d // db
    L = db * p_seg
    vmem_limit = int(min((3 * cap) // 4, 96 * 1024 * 1024))

    # --- one-time input prep (XLA glue): pad H/W, parity-split (space-to-depth) so the
    #     nine stride-2 taps become static lane shifts, flatten db depth slices onto the
    #     lane axis, add `tail` zero lanes of shift slack per block.
    xp = jnp.pad(x, ((0, 0), (0, 0), (0, 0),
                     (1, 2 * hq2 - h - 1), (1, 2 * wq - w - 1)))
    xp = xp.reshape(n, cin, nb, db, hq2, 2, wq, 2)
    xp = jnp.transpose(xp, (0, 2, 5, 7, 1, 3, 4, 6))   # (n, nb, rh, rw, cin, db, hq2, wq)
    x_prep = xp.reshape(n, nb, 4, cin, L)
    x_prep = jnp.pad(x_prep, ((0, 0), (0, 0), (0, 0), (0, 0), (0, tail)))

    # weights folded to (Cout, 9*Cin); tap order matches the in-kernel concat
    w_flat = jnp.transpose(w9, (1, 0, 2)).reshape(cout, 9 * cin)

    # valid-position mask (excludes halo rows/cols and slack rows of each segment)
    r = jnp.arange(p_seg, dtype=jnp.int32)
    valid = ((r // wq) < ho) & ((r % wq) < wo)
    mask = jnp.tile(valid, (db,)).astype(jnp.float32).reshape(1, L)

    kern1 = functools.partial(_conv_stats_kernel, wq=wq, L=L, cin=cin, fold=fold)
    y, ysum, ysq = pl.pallas_call(
        kern1,
        grid=(n, nb),
        in_specs=[
            pl.BlockSpec((None, None, 4, cin, L + tail), lambda i, j: (i, j, 0, 0, 0)),
            pl.BlockSpec((cout, 9 * cin), lambda i, j: (0, 0)),
            pl.BlockSpec((cout, 1), lambda i, j: (0, 0)),
            pl.BlockSpec((1, L), lambda i, j: (0, 0)),
        ],
        out_specs=[
            pl.BlockSpec((None, None, cout, L), lambda i, j: (i, j, 0, 0)),
            pl.BlockSpec((None, cout, 1), lambda i, j: (i, 0, 0)),
            pl.BlockSpec((None, cout, 1), lambda i, j: (i, 0, 0)),
        ],
        out_shape=[
            jax.ShapeDtypeStruct((n, nb, cout, L), jnp.bfloat16),
            jax.ShapeDtypeStruct((n, cout, 1), jnp.float32),
            jax.ShapeDtypeStruct((n, cout, 1), jnp.float32),
        ],
        compiler_params=pltpu.CompilerParams(
            dimension_semantics=("parallel", "arbitrary"),
            vmem_limit_bytes=vmem_limit,
        ),
    )(x_prep, w_flat, b.reshape(cout, 1), mask)

    # per-(sample, channel) InstanceNorm scale/shift, computed once (tiny XLA op)
    cnt = float(d * ho * wo)
    mean = ysum[..., 0] / cnt
    var = ysq[..., 0] / cnt - mean * mean
    scale = gamma[None, :] * lax.rsqrt(var + EPS)
    shift = beta[None, :] - mean * scale
    scale5 = scale.reshape(n, cout, 1, 1, 1)
    shift5 = shift.reshape(n, cout, 1, 1, 1)

    # expose (depth, row, col) and drop the halo lanes; the only remaining XLA relayout
    # (kept out of the kernel so Mosaic never lowers a minor-dim reshape).
    y_v = y.reshape(n, nb, cout, db, hq2, wq)[:, :, :, :, :ho, :wo]

    out = pl.pallas_call(
        _norm_lrelu_kernel,
        grid=(n, nb),
        in_specs=[
            pl.BlockSpec((None, None, cout, db, ho, wo), lambda i, j: (i, j, 0, 0, 0, 0)),
            pl.BlockSpec((None, cout, 1, 1, 1), lambda i, j: (i, 0, 0, 0, 0)),
            pl.BlockSpec((None, cout, 1, 1, 1), lambda i, j: (i, 0, 0, 0, 0)),
        ],
        out_specs=pl.BlockSpec((None, cout, db, ho, wo), lambda i, j: (i, 0, j, 0, 0)),
        out_shape=jax.ShapeDtypeStruct((n, cout, d, ho, wo), x.dtype),
        compiler_params=pltpu.CompilerParams(
            dimension_semantics=("parallel", "parallel"),
            vmem_limit_bytes=vmem_limit,
        ),
    )(y_v, scale5, shift5)
    return out


# ---------------------------------------------------------------------------
# Deterministic parameter init (shapes from the module's __init__)
# ---------------------------------------------------------------------------
def init_params(key, cin, cout):
    ks = jax.random.split(key, 4)
    s = 1.0 / (cin * 9) ** 0.5
    return dict(
        w=jax.random.uniform(ks[0], (9, cout, cin), jnp.float32, -s, s),  # tap kh*3+kw
        b=jax.random.uniform(ks[1], (cout,), jnp.float32, -s, s),
        gamma=1.0 + 0.1 * jax.random.normal(ks[2], (cout,), jnp.float32),
        beta=0.1 * jax.random.normal(ks[3], (cout,), jnp.float32),
    )


# ---------------------------------------------------------------------------
# Pure-JAX reference (mirrors the PyTorch forward) for the correctness check
# ---------------------------------------------------------------------------
def reference(x, p):
    cout, cin = p["w"].shape[1], p["w"].shape[2]
    w = jnp.transpose(p["w"].reshape(3, 3, cout, cin), (2, 3, 0, 1))[:, :, None, :, :]
    dn = ("NCDHW", "OIDHW", "NCDHW")
    y = lax.conv_general_dilated(x, w, window_strides=(1, 2, 2),
                                 padding=((0, 0), (1, 1), (1, 1)),
                                 dimension_numbers=dn,
                                 precision=lax.Precision.HIGHEST)
    y = y + p["b"][None, :, None, None, None]
    mean = y.mean(axis=(2, 3, 4), keepdims=True)
    var = ((y - mean) ** 2).mean(axis=(2, 3, 4), keepdims=True)
    y = (y - mean) * lax.rsqrt(var + EPS)
    y = y * p["gamma"][None, :, None, None, None] + p["beta"][None, :, None, None, None]
    return jnp.where(y >= 0, y, NEG_SLOPE * y)


if __name__ == "__main__":
    key = jax.random.PRNGKey(0)
    kx, kp = jax.random.split(key)
    N, CIN, COUT, D, H, W = 2, 8, 16, 8, 16, 16
    x = jax.random.normal(kx, (N, CIN, D, H, W), jnp.float32)
    params = init_params(kp, CIN, COUT)

    fn = jax.jit(down_pallas)
    out = jax.block_until_ready(fn(x, params))

    assert out.shape == (N, COUT, D, H // 2, W // 2), out.shape
    ref = reference(x, params)
    err = float(jnp.max(jnp.abs(out - ref)))
    assert jnp.allclose(out, ref, atol=3e-2, rtol=3e-2), err
    print("KERNEL_OK")
</pallas_src>

<mosaic_0001>
module attributes {stable_mosaic.version = 11 : i64} {
  func.func @_conv_stats_kernel(%arg0: i32, %arg1: i32, %arg2: memref<1x1x4x8x802xf32, #tpu.memory_space<vmem>>, %arg3: memref<16x72xf32, #tpu.memory_space<vmem>>, %arg4: memref<16x1xf32, #tpu.memory_space<vmem>>, %arg5: memref<1x792xf32, #tpu.memory_space<vmem>>, %arg6: memref<1x1x16x792xbf16, #tpu.memory_space<vmem>>, %arg7: memref<1x16x1xf32, #tpu.memory_space<vmem>>, %arg8: memref<1x16x1xf32, #tpu.memory_space<vmem>>) attributes {dimension_semantics = [#tpu.dimension_semantics<parallel>, #tpu.dimension_semantics<arbitrary>], iteration_bounds = array<i64: 2, 1>, scalar_prefetch = 0 : i64, scratch_operands = 0 : i64, tpu.core_type = #tpu.core_type<tc>, window_params = [{transform_indices = @transform_0, window_bounds = array<i64: 1, 1, 4, 8, 802>}, {pipeline_mode = #tpu.pipeline_mode<synchronous>, transform_indices = @transform_1, window_bounds = array<i64: 16, 72>}, {pipeline_mode = #tpu.pipeline_mode<synchronous>, transform_indices = @transform_2, window_bounds = array<i64: 16, 1>}, {pipeline_mode = #tpu.pipeline_mode<synchronous>, transform_indices = @transform_3, window_bounds = array<i64: 1, 792>}, {transform_indices = @transform_4, window_bounds = array<i64: 1, 1, 16, 792>}, {transform_indices = @transform_5, window_bounds = array<i64: 1, 16, 1>}, {transform_indices = @transform_6, window_bounds = array<i64: 1, 16, 1>}]} {
    %c0_i32 = arith.constant 0 : i32
    %0 = arith.cmpi eq, %arg1, %c0_i32 : i32
    %1 = arith.extui %0 : i1 to i32
    %c0_i32_0 = arith.constant 0 : i32
    %2 = arith.cmpi ne, %1, %c0_i32_0 : i32
    scf.if %2 {
      %cst_64 = arith.constant 0.000000e+00 : f32
      %51 = vector.broadcast %cst_64 : f32 to vector<16x1xf32>
      %c0_65 = arith.constant 0 : index
      %c0_66 = arith.constant 0 : index
      %c0_67 = arith.constant 0 : index
      %52 = vector.load %arg7[%c0_65, %c0_66, %c0_67] : memref<1x16x1xf32, #tpu.memory_space<vmem>>, vector<1x16x1xf32>
      %53 = vector.shape_cast %52 : vector<1x16x1xf32> to vector<16x1xf32>
      %54 = vector.shape_cast %51 : vector<16x1xf32> to vector<1x16x1xf32>
      tpu.vector_store %arg7[%c0_65, %c0_66, %c0_67], %54 {strides = array<i32>} : memref<1x16x1xf32, #tpu.memory_space<vmem>>, vector<1x16x1xf32>,
      %cst_68 = arith.constant 0.000000e+00 : f32
      %55 = vector.broadcast %cst_68 : f32 to vector<16x1xf32>
      %c0_69 = arith.constant 0 : index
      %c0_70 = arith.constant 0 : index
      %c0_71 = arith.constant 0 : index
      %56 = vector.load %arg8[%c0_69, %c0_70, %c0_71] : memref<1x16x1xf32, #tpu.memory_space<vmem>>, vector<1x16x1xf32>
      %57 = vector.shape_cast %56 : vector<1x16x1xf32> to vector<16x1xf32>
      %58 = vector.shape_cast %55 : vector<16x1xf32> to vector<1x16x1xf32>
      tpu.vector_store %arg8[%c0_69, %c0_70, %c0_71], %58 {strides = array<i32>} : memref<1x16x1xf32, #tpu.memory_space<vmem>>, vector<1x16x1xf32>,
    } else {
    }
    %c0 = arith.constant 0 : index
    %c0_1 = arith.constant 0 : index
    %c0_2 = arith.constant 0 : index
    %c0_3 = arith.constant 0 : index
    %c0_4 = arith.constant 0 : index
    %3 = vector.load %arg2[%c0, %c0_1, %c0_2, %c0_3, %c0_4] : memref<1x1x4x8x802xf32, #tpu.memory_space<vmem>>, vector<1x1x1x8x792xf32>
    %4 = vector.shape_cast %3 : vector<1x1x1x8x792xf32> to vector<8x792xf32>
    %c0_5 = arith.constant 0 : index
    %c0_6 = arith.constant 0 : index
    %c1 = arith.constant 1 : index
    %c0_7 = arith.constant 0 : index
    %c0_8 = arith.constant 0 : index
    %5 = vector.load %arg2[%c0_5, %c0_6, %c1, %c0_7, %c0_8] : memref<1x1x4x8x802xf32, #tpu.memory_space<vmem>>, vector<1x1x1x8x792xf32>
    %6 = vector.shape_cast %5 : vector<1x1x1x8x792xf32> to vector<8x792xf32>
    %c0_9 = arith.constant 0 : index
    %c0_10 = arith.constant 0 : index
    %c0_11 = arith.constant 0 : index
    %c0_12 = arith.constant 0 : index
    %c1_13 = arith.constant 1 : index
    %7 = vector.load %arg2[%c0_9, %c0_10, %c0_11, %c0_12, %c1_13] : memref<1x1x4x8x802xf32, #tpu.memory_space<vmem>>, vector<1x1x1x8x792xf32>
    %8 = vector.shape_cast %7 : vector<1x1x1x8x792xf32> to vector<8x792xf32>
    %c0_14 = arith.constant 0 : index
    %c0_15 = arith.constant 0 : index
    %c2 = arith.constant 2 : index
    %c0_16 = arith.constant 0 : index
    %c0_17 = arith.constant 0 : index
    %9 = vector.load %arg2[%c0_14, %c0_15, %c2, %c0_16, %c0_17] : memref<1x1x4x8x802xf32, #tpu.memory_space<vmem>>, vector<1x1x1x8x792xf32>
    %10 = vector.shape_cast %9 : vector<1x1x1x8x792xf32> to vector<8x792xf32>
    %c0_18 = arith.constant 0 : index
    %c0_19 = arith.constant 0 : index
    %c3 = arith.constant 3 : index
    %c0_20 = arith.constant 0 : index
    %c0_21 = arith.constant 0 : index
    %11 = vector.load %arg2[%c0_18, %c0_19, %c3, %c0_20, %c0_21] : memref<1x1x4x8x802xf32, #tpu.memory_space<vmem>>, vector<1x1x1x8x792xf32>
    %12 = vector.shape_cast %11 : vector<1x1x1x8x792xf32> to vector<8x792xf32>
    %c0_22 = arith.constant 0 : index
    %c0_23 = arith.constant 0 : index
    %c2_24 = arith.constant 2 : index
    %c0_25 = arith.constant 0 : index
    %c1_26 = arith.constant 1 : index
    %13 = vector.load %arg2[%c0_22, %c0_23, %c2_24, %c0_25, %c1_26] : memref<1x1x4x8x802xf32, #tpu.memory_space<vmem>>, vector<1x1x1x8x792xf32>
    %14 = vector.shape_cast %13 : vector<1x1x1x8x792xf32> to vector<8x792xf32>
    %c0_27 = arith.constant 0 : index
    %c0_28 = arith.constant 0 : index
    %c0_29 = arith.constant 0 : index
    %c0_30 = arith.constant 0 : index
    %c9 = arith.constant 9 : index
    %15 = vector.load %arg2[%c0_27, %c0_28, %c0_29, %c0_30, %c9] : memref<1x1x4x8x802xf32, #tpu.memory_space<vmem>>, vector<1x1x1x8x792xf32>
    %16 = vector.shape_cast %15 : vector<1x1x1x8x792xf32> to vector<8x792xf32>
    %c0_31 = arith.constant 0 : index
    %c0_32 = arith.constant 0 : index
    %c1_33 = arith.constant 1 : index
    %c0_34 = arith.constant 0 : index
    %c9_35 = arith.constant 9 : index
    %17 = vector.load %arg2[%c0_31, %c0_32, %c1_33, %c0_34, %c9_35] : memref<1x1x4x8x802xf32, #tpu.memory_space<vmem>>, vector<1x1x1x8x792xf32>
    %18 = vector.shape_cast %17 : vector<1x1x1x8x792xf32> to vector<8x792xf32>
    %c0_36 = arith.constant 0 : index
    %c0_37 = arith.constant 0 : index
    %c0_38 = arith.constant 0 : index
    %c0_39 = arith.constant 0 : index
    %c10 = arith.constant 10 : index
    %19 = vector.load %arg2[%c0_36, %c0_37, %c0_38, %c0_39, %c10] : memref<1x1x4x8x802xf32, #tpu.memory_space<vmem>>, vector<1x1x1x8x792xf32>
    %20 = vector.shape_cast %19 : vector<1x1x1x8x792xf32> to vector<8x792xf32>
    %21 = tpu.concatenate %4, %6, %8, %10, %12, %14, %16, %18, %20 in 0 : vector<8x792xf32>, vector<8x792xf32>, vector<8x792xf32>, vector<8x792xf32>, vector<8x792xf32>, vector<8x792xf32>, vector<8x792xf32>, vector<8x792xf32>, vector<8x792xf32> -> vector<72x792xf32>
    %c0_40 = arith.constant 0 : index
    %c0_41 = arith.constant 0 : index
    %22 = vector.load %arg3[%c0_40, %c0_41] : memref<16x72xf32, #tpu.memory_space<vmem>>, vector<16x72xf32>
    %cst = arith.constant dense<0.000000e+00> : vector<16x792xf32>
    %23 = tpu.matmul %22, %21, %cst {dimension_numbers = #tpu.dot_dimension_numbers<[1], [0], [0], [1], [0, 0, 1, 1], [], []>} : vector<16x72xf32>, vector<72x792xf32>, vector<16x792xf32> -> vector<16x792xf32>
    %c0_42 = arith.constant 0 : index
    %c0_43 = arith.constant 0 : index
    %24 = vector.load %arg4[%c0_42, %c0_43] : memref<16x1xf32, #tpu.memory_space<vmem>>, vector<16x1xf32>
    %25 = vector.broadcast %24 : vector<16x1xf32> to vector<16x792xf32>
    %26 = arith.addf %23, %25 : vector<16x792xf32>
    %27 = arith.truncf %26 : vector<16x792xf32> to vector<16x792xbf16>
    %c0_44 = arith.constant 0 : index
    %c0_45 = arith.constant 0 : index
    %c0_46 = arith.constant 0 : index
    %c0_47 = arith.constant 0 : index
    %28 = vector.load %arg6[%c0_44, %c0_45, %c0_46, %c0_47] : memref<1x1x16x792xbf16, #tpu.memory_space<vmem>>, vector<1x1x16x792xbf16>
    %29 = vector.shape_cast %28 : vector<1x1x16x792xbf16> to vector<16x792xbf16>
    %30 = vector.shape_cast %27 : vector<16x792xbf16> to vector<1x1x16x792xbf16>
    tpu.vector_store %arg6[%c0_44, %c0_45, %c0_46, %c0_47], %30 {strides = array<i32>} : memref<1x1x16x792xbf16, #tpu.memory_space<vmem>>, vector<1x1x16x792xbf16>,
    %c0_48 = arith.constant 0 : index
    %c0_49 = arith.constant 0 : index
    %31 = vector.load %arg5[%c0_48, %c0_49] : memref<1x792xf32, #tpu.memory_space<vmem>>, vector<1x792xf32>
    %32 = vector.broadcast %31 : vector<1x792xf32> to vector<16x792xf32>
    %33 = arith.mulf %26, %32 : vector<16x792xf32>
    %c0_50 = arith.constant 0 : index
    %c0_51 = arith.constant 0 : index
    %c0_52 = arith.constant 0 : index
    %34 = vector.load %arg7[%c0_50, %c0_51, %c0_52] : memref<1x16x1xf32, #tpu.memory_space<vmem>>, vector<1x16x1xf32>
    %35 = vector.shape_cast %34 : vector<1x16x1xf32> to vector<16x1xf32>
    %cst_53 = arith.constant dense<0.000000e+00> : vector<16xf32>
    %36 = vector.multi_reduction <add>, %33, %cst_53 [1] : vector<16x792xf32> to vector<16xf32>
    %37 = vector.shape_cast %36 : vector<16xf32> to vector<16x1xf32>
    %38 = arith.addf %35, %37 : vector<16x1xf32>
    %c0_54 = arith.constant 0 : index
    %c0_55 = arith.constant 0 : index
    %c0_56 = arith.constant 0 : index
    %39 = vector.load %arg7[%c0_54, %c0_55, %c0_56] : memref<1x16x1xf32, #tpu.memory_space<vmem>>, vector<1x16x1xf32>
    %40 = vector.shape_cast %39 : vector<1x16x1xf32> to vector<16x1xf32>
    %41 = vector.shape_cast %38 : vector<16x1xf32> to vector<1x16x1xf32>
    tpu.vector_store %arg7[%c0_54, %c0_55, %c0_56], %41 {strides = array<i32>} : memref<1x16x1xf32, #tpu.memory_space<vmem>>, vector<1x16x1xf32>,
    %c0_57 = arith.constant 0 : index
    %c0_58 = arith.constant 0 : index
    %c0_59 = arith.constant 0 : index
    %42 = vector.load %arg8[%c0_57, %c0_58, %c0_59] : memref<1x16x1xf32, #tpu.memory_space<vmem>>, vector<1x16x1xf32>
    %43 = vector.shape_cast %42 : vector<1x16x1xf32> to vector<16x1xf32>
    %44 = arith.mulf %33, %26 : vector<16x792xf32>
    %cst_60 = arith.constant dense<0.000000e+00> : vector<16xf32>
    %45 = vector.multi_reduction <add>, %44, %cst_60 [1] : vector<16x792xf32> to vector<16xf32>
    %46 = vector.shape_cast %45 : vector<16xf32> to vector<16x1xf32>
    %47 = arith.addf %43, %46 : vector<16x1xf32>
    %c0_61 = arith.constant 0 : index
    %c0_62 = arith.constant 0 : index
    %c0_63 = arith.constant 0 : index
    %48 = vector.load %arg8[%c0_61, %c0_62, %c0_63] : memref<1x16x1xf32, #tpu.memory_space<vmem>>, vector<1x16x1xf32>
    %49 = vector.shape_cast %48 : vector<1x16x1xf32> to vector<16x1xf32>
    %50 = vector.shape_cast %47 : vector<16x1xf32> to vector<1x16x1xf32>
    tpu.vector_store %arg8[%c0_61, %c0_62, %c0_63], %50 {strides = array<i32>} : memref<1x16x1xf32, #tpu.memory_space<vmem>>, vector<1x16x1xf32>,
    return
  }
  func.func @transform_0(%arg0: i32, %arg1: i32) -> (i32, i32, i32, i32, i32) {
    %c0_i32 = arith.constant 0 : i32
    %c0_i32_0 = arith.constant 0 : i32
    %c0_i32_1 = arith.constant 0 : i32
    %c0_i32_2 = arith.constant 0 : i32
    return %arg0, %arg1, %c0_i32, %c0_i32_0, %c0_i32_1 : i32, i32, i32, i32, i32
  }
  func.func @transform_1(%arg0: i32, %arg1: i32) -> (i32, i32) {
    %c0_i32 = arith.constant 0 : i32
    %c0_i32_0 = arith.constant 0 : i32
    %c0_i32_1 = arith.constant 0 : i32
    return %c0_i32, %c0_i32_0 : i32, i32
  }
  func.func @transform_2(%arg0: i32, %arg1: i32) -> (i32, i32) {
    %c0_i32 = arith.constant 0 : i32
    %c0_i32_0 = arith.constant 0 : i32
    %c0_i32_1 = arith.constant 0 : i32
    return %c0_i32, %c0_i32_0 : i32, i32
  }
  func.func @transform_3(%arg0: i32, %arg1: i32) -> (i32, i32) {
    %c0_i32 = arith.constant 0 : i32
    %c0_i32_0 = arith.constant 0 : i32
    %c0_i32_1 = arith.constant 0 : i32
    return %c0_i32, %c0_i32_0 : i32, i32
  }
  func.func @transform_4(%arg0: i32, %arg1: i32) -> (i32, i32, i32, i32) {
    %c0_i32 = arith.constant 0 : i32
    %c0_i32_0 = arith.constant 0 : i32
    %c0_i32_1 = arith.constant 0 : i32
    return %arg0, %arg1, %c0_i32, %c0_i32_0 : i32, i32, i32, i32
  }
  func.func @transform_5(%arg0: i32, %arg1: i32) -> (i32, i32, i32) {
    %c0_i32 = arith.constant 0 : i32
    %c0_i32_0 = arith.constant 0 : i32
    %c0_i32_1 = arith.constant 0 : i32
    return %arg0, %c0_i32, %c0_i32_0 : i32, i32, i32
  }
  func.func @transform_6(%arg0: i32, %arg1: i32) -> (i32, i32, i32) {
    %c0_i32 = arith.constant 0 : i32
    %c0_i32_0 = arith.constant 0 : i32
    %c0_i32_1 = arith.constant 0 : i32
    return %arg0, %c0_i32, %c0_i32_0 : i32, i32, i32
  }
}

module attributes {stable_mosaic.version = 11 : i64} {
  func.func @_norm_lrelu_kernel(%arg0: i32, %arg1: i32, %arg2: memref<1x1x16x8x8x8xbf16, #tpu.memory_space<vmem>>, %arg3: memref<1x16x1x1x1xf32, #tpu.memory_space<vmem>>, %arg4: memref<1x16x1x1x1xf32, #tpu.memory_space<vmem>>, %arg5: memref<1x16x8x8x8xf32, #tpu.memory_space<vmem>>) attributes {dimension_semantics = [#tpu.dimension_semantics<parallel>, #tpu.dimension_semantics<parallel>], iteration_bounds = array<i64: 2, 1>, scalar_prefetch = 0 : i64, scratch_operands = 0 : i64, tpu.core_type = #tpu.core_type<tc>, window_params = [{transform_indices = @transform_0, window_bounds = array<i64: 1, 1, 16, 8, 8, 8>}, {transform_indices = @transform_1, window_bounds = array<i64: 1, 16, 1, 1, 1>}, {transform_indices = @transform_2, window_bounds = array<i64: 1, 16, 1, 1, 1>}, {transform_indices = @transform_3, window_bounds = array<i64: 1, 16, 8, 8, 8>}]} {
    %c0 = arith.constant 0 : index
    %c0_0 = arith.constant 0 : index
    %c0_1 = arith.constant 0 : index
    %c0_2 = arith.constant 0 : index
    %c0_3 = arith.constant 0 : index
    %c0_4 = arith.constant 0 : index
    %0 = vector.load %arg2[%c0, %c0_0, %c0_1, %c0_2, %c0_3, %c0_4] : memref<1x1x16x8x8x8xbf16, #tpu.memory_space<vmem>>, vector<1x1x16x8x8x8xbf16>
    %1 = vector.shape_cast %0 : vector<1x1x16x8x8x8xbf16> to vector<16x8x8x8xbf16>
    %2 = arith.extf %1 : vector<16x8x8x8xbf16> to vector<16x8x8x8xf32>
    %c0_5 = arith.constant 0 : index
    %c0_6 = arith.constant 0 : index
    %c0_7 = arith.constant 0 : index
    %c0_8 = arith.constant 0 : index
    %c0_9 = arith.constant 0 : index
    %3 = vector.load %arg3[%c0_5, %c0_6, %c0_7, %c0_8, %c0_9] : memref<1x16x1x1x1xf32, #tpu.memory_space<vmem>>, vector<1x16x1x1x1xf32>
    %4 = vector.shape_cast %3 : vector<1x16x1x1x1xf32> to vector<16x1x1x1xf32>
    %5 = vector.broadcast %4 : vector<16x1x1x1xf32> to vector<16x8x8x8xf32>
    %6 = arith.mulf %2, %5 : vector<16x8x8x8xf32>
    %c0_10 = arith.constant 0 : index
    %c0_11 = arith.constant 0 : index
    %c0_12 = arith.constant 0 : index
    %c0_13 = arith.constant 0 : index
    %c0_14 = arith.constant 0 : index
    %7 = vector.load %arg4[%c0_10, %c0_11, %c0_12, %c0_13, %c0_14] : memref<1x16x1x1x1xf32, #tpu.memory_space<vmem>>, vector<1x16x1x1x1xf32>
    %8 = vector.shape_cast %7 : vector<1x16x1x1x1xf32> to vector<16x1x1x1xf32>
    %9 = vector.broadcast %8 : vector<16x1x1x1xf32> to vector<16x8x8x8xf32>
    %10 = arith.addf %6, %9 : vector<16x8x8x8xf32>
    %cst = arith.constant 0.000000e+00 : f32
    %11 = vector.broadcast %cst : f32 to vector<16x8x8x8xf32>
    %12 = arith.cmpf oge, %10, %11 : vector<16x8x8x8xf32>
    %cst_15 = arith.constant 0.00999999977 : f32
    %13 = vector.broadcast %cst_15 : f32 to vector<16x8x8x8xf32>
    %14 = arith.mulf %13, %10 : vector<16x8x8x8xf32>
    %15 = arith.select %12, %10, %14 : vector<16x8x8x8xi1>, vector<16x8x8x8xf32>
    %c0_16 = arith.constant 0 : index
    %c0_17 = arith.constant 0 : index
    %c0_18 = arith.constant 0 : index
    %c0_19 = arith.constant 0 : index
    %c0_20 = arith.constant 0 : index
    %16 = vector.load %arg5[%c0_16, %c0_17, %c0_18, %c0_19, %c0_20] : memref<1x16x8x8x8xf32, #tpu.memory_space<vmem>>, vector<1x16x8x8x8xf32>
    %17 = vector.shape_cast %16 : vector<1x16x8x8x8xf32> to vector<16x8x8x8xf32>
    %18 = vector.shape_cast %15 : vector<16x8x8x8xf32> to vector<1x16x8x8x8xf32>
    tpu.vector_store %arg5[%c0_16, %c0_17, %c0_18, %c0_19, %c0_20], %18 {strides = array<i32>} : memref<1x16x8x8x8xf32, #tpu.memory_space<vmem>>, vector<1x16x8x8x8xf32>,
    return
  }
  func.func @transform_0(%arg0: i32, %arg1: i32) -> (i32, i32, i32, i32, i32, i32) {
    %c0_i32 = arith.constant 0 : i32
    %c0_i32_0 = arith.constant 0 : i32
    %c0_i32_1 = arith.constant 0 : i32
    %c0_i32_2 = arith.constant 0 : i32
    %c0_i32_3 = arith.constant 0 : i32
    return %arg0, %arg1, %c0_i32, %c0_i32_0, %c0_i32_1, %c0_i32_2 : i32, i32, i32, i32, i32, i32
  }
  func.func @transform_1(%arg0: i32, %arg1: i32) -> (i32, i32, i32, i32, i32) {
    %c0_i32 = arith.constant 0 : i32
    %c0_i32_0 = arith.constant 0 : i32
    %c0_i32_1 = arith.constant 0 : i32
    %c0_i32_2 = arith.constant 0 : i32
    %c0_i32_3 = arith.constant 0 : i32
    return %arg0, %c0_i32, %c0_i32_0, %c0_i32_1, %c0_i32_2 : i32, i32, i32, i32, i32
  }
  func.func @transform_2(%arg0: i32, %arg1: i32) -> (i32, i32, i32, i32, i32) {
    %c0_i32 = arith.constant 0 : i32
    %c0_i32_0 = arith.constant 0 : i32
    %c0_i32_1 = arith.constant 0 : i32
    %c0_i32_2 = arith.constant 0 : i32
    %c0_i32_3 = arith.constant 0 : i32
    return %arg0, %c0_i32, %c0_i32_0, %c0_i32_1, %c0_i32_2 : i32, i32, i32, i32, i32
  }
  func.func @transform_3(%arg0: i32, %arg1: i32) -> (i32, i32, i32, i32, i32) {
    %c0_i32 = arith.constant 0 : i32
    %c0_i32_0 = arith.constant 0 : i32
    %c0_i32_1 = arith.constant 0 : i32
    %c0_i32_2 = arith.constant 0 : i32
    return %arg0, %c0_i32, %arg1, %c0_i32_0, %c0_i32_1 : i32, i32, i32, i32, i32
  }
}

</mosaic_0001>

<bundles_post_ra>
// kernel: down_pallas.2
= control target key start
LH: loop header
LB: loop body
LE: loop exit
PB: predicated region body
PF: predicated region fallthrough
CT: control target
= control target key end

     0   :  { %s1488_s21 = smov 0   ;;  %s1490_s22 = smov 0   ;;  %s1805_s0 = inlined_call_operand.vmem [shape: f32[2,1,4,8,802], index: 0, kind: input, shape index: {}]   ;;  %s1806_s1 = inlined_call_operand.vmem [shape: f32[16,72], index: 1, kind: input, shape index: {}]   ;;  %s1807_s2 = inlined_call_operand.vmem [shape: f32[16,1], index: 2, kind: input, shape index: {}]   ;;  %s1808_s3 = inlined_call_operand.vmem [shape: f32[1,792], index: 3, kind: input, shape index: {}]   ;;  %s1809_s4 = inlined_call_operand.vmem [shape: bf16[2,1,16,792], index: 4, kind: output, shape index: {0}]   ;;  %s1810_s5 = inlined_call_operand.vmem [shape: f32[2,16,1], index: 5, kind: output, shape index: {1}]   ;;  %s1811_s6 = inlined_call_operand.vmem [shape: f32[2,16,1], index: 6, kind: output, shape index: {2}]  }
   0x1   :  { %s1492_s23 = smov 0  }
   0x2 LB: > { %s29_s24 = sadd.s32 1, %s1442_s22  ;;  %p1169_p0 = scmp.ge.s32.totalorder %s1446_s23, 1  ;;  %s1446_s23 = sphi %s1492_s23, %s17_s23   ;;  %s1442_s22 = sphi %s1490_s22, %s1813_s22   ;;  %s1438_s21 = sphi %s1488_s21, %s1812_s21  }
   0x3   : > { %p31_p1 = scmp.ge.s32.totalorder %s29_s24, 2  ;;  %p237_p2 = scmp.lt.s32.totalorder %s1446_s23, 3 }
   0x5   : > { %s1815_s24 = smov (%p31_p1, %s29_s24), 0  ;;  %p238_p3 = pnand %p1169_p0, %p237_p2 }
   0x6   : > { %p285_p4 = scmp.lt.s32.totalorder (!%p238_p3), %s1438_s21, 1  ;;  %s1448_s29 = smov (!%p238_p3), 127   ;;  %v1450_v31 = vmov (!%p238_p3), 0.0   ;;  %v514_v40 = vld [vmem:[%s1807_s2] sm:$0xff] (!%p238_p3)  ;;  %v1452_v41 = vmov (!%p238_p3), 0   ;;  %v515_v42 = vld [vmem:[%s1807_s2 + $0x8] sm:$0xff] (!%p238_p3) }
   0x7   : > { %241 = sbr.rel (%p238_p3) target bundleno = 559 (0x22f), region = 36  ;;  %s1449_s30 = smov (!%p238_p3), 119   ;;  %597 = vmatprep.mubr.f32.mxu0 (!%p238_p3), %v1450_v31  ;;  %674 = vmatprep.mubr.f32.mxu1 (!%p238_p3), %v1450_v31  ;;  %vm374_vm0 = vcmask (!%p238_p3), 1039360   ;;  %vm436_vm1 = vcmask (!%p238_p3), 973824   ;;  %vm498_vm2 = vcmask (!%p238_p3), 965632   ;;  %vm526_vm3 = vcmask (!%p238_p3), 588800  }
   0x8   : > { %s1451_s7 = smov (!%p238_p3), 118   ;;  %1422 = vset.pattern.permute.xlu1 (!%p238_p3), %v1452_v41  ;;  %1423 = vset.pattern.permute.xlu0 (!%p238_p3), %v1452_v41  ;;  %vm317_vm4 = vcmask (!%p238_p3), 7168   ;;  %vm886_vm5 = vcmask (!%p238_p3), 191488   ;;  %vm950_vm6 = vcmask (!%p238_p3), 195584  }
   0xe   : > { %s1817_s21 = smov (!%p285_p4, %s1438_s21), 1 }
   0xf   : > { %s1321_s25 = smul.u32 224, %s1817_s21  ;;  %s1215_s16 = sshll.u32 %s1817_s21, 4 }
  0x10   : > { %s1712_s19 = scalar_lea.vmem %s1810_s5, %s1215_s16  ;;  %s1322_s26 = smul.u32 56, %s1817_s21 }
  0x11   : > { %s1512_s28 = scalar_lea.vmem %s1805_s0, %s1321_s25  ;;  %318 = vst.msk [vmem:[%s1712_s19] sm:$0xff] %vm317_vm4, %v1450_v31  ;;  %319 = vst.msk [vmem:[%s1712_s19 + $0x8] sm:$0xff] %vm317_vm4, %v1450_v31  ;;  %s312_s8 = scalar_lea.vmem %s1811_s6, %s1215_s16 }
  0x12   : > { %v1515_v0 = vld [vmem:[%s1512_s28 + $0x70] sm:$0xff]  ;;  %v1518_v1 = vld [vmem:[%s1512_s28 + $0x80] sm:$0xff]  ;;  %v323_v2 = vld [vmem:[%s1512_s28 + $0x8] sm:$0xff]  ;;  %320 = vst.msk [vmem:[%s312_s8] sm:$0xff] %vm317_vm4, %v1450_v31 }
  0x13   : > { %v1362_v3 = vpack.i.bf16 %v1515_v0, %v1518_v1  ;;  %v324_v4 = vld [vmem:[%s1512_s28 + $0x10] sm:$0xff]  ;;  %v325_v5 = vld [vmem:[%s1512_s28 + $0x18] sm:$0xff]  ;;  %v1526_v6 = vld [vmem:[%s1512_s28 + $0x20] sm:$0xff]  ;;  %321 = vst.msk [vmem:[%s312_s8 + $0x8] sm:$0xff] %vm317_vm4, %v1450_v31 }
  0x14   : > { %v1352_v7 = vpack.i.bf16 %v324_v4, %v323_v2  ;;  %v322_v8 = vld [vmem:[%s1512_s28] sm:$0xff]  ;;  %v1530_v9 = vld [vmem:[%s1512_s28 + $0x78] sm:$0xff]  ;;  %v1367_v11 = vpack.i.bf16 %v1526_v6, %v325_v5  ;;  %v1178_v14 = vld [vmem:[%s1512_s28 + $0x48] sm:$0xff] }
  0x15   : > { %v1177_v10 = vld [vmem:[%s1512_s28 + $0x40] sm:$0xff]  ;;  %1363 = vrot.lane.b32.xlu1 %v1362_v3, %s1448_s29  ;;  %v1357_v13 = vpack.i.bf16 %v1530_v9, %v322_v8  ;;  %v1176_v15 = vld [vmem:[%s1512_s28 + $0x38] sm:$0xff]  ;;  %v1179_v17 = vld [vmem:[%s1512_s28 + $0x50] sm:$0xff]  ;;  %v1275_v20 = vpack.c.bf16 %v1178_v14, %v324_v4 }
  0x16   : > { %v1257_v12 = vpack.c.bf16 %v1177_v10, %v323_v2  ;;  %1353 = vrot.lane.b32.xlu0 %v1352_v7, %s1448_s29  ;;  %v1540_v16 = vld [vmem:[%s1512_s28 + $0x58] sm:$0xff]  ;;  %v1259_v19 = vpack.c.bf16 %v1176_v15, %v322_v8  ;;  %v1273_v21 = vpack.c.bf16 %v1179_v17, %v325_v5  ;;  %v1377_v22 = vpack.i.bf16 %v1178_v14, %v1177_v10  ;;  %v1548_v23 = vld [vmem:[%s1512_s28 + $0x88] sm:$0xff]  ;;  %v1551_v24 = vld [vmem:[%s1512_s28 + $0x90] sm:$0xff] }
  0x17   : > { %v1291_v18 = vpack.c.bf16 %v1540_v16, %v1526_v6  ;;  %v1387_v25 = vpack.i.bf16 %v1551_v24, %v1548_v23  ;;  %v1382_v26 = vpack.i.bf16 %v1176_v15, %v322_v8  ;;  %v1397_v27 = vpack.i.bf16 %v1540_v16, %v1179_v17  ;;  %v1561_v28 = vld [vmem:[%s1512_s28 + $0x28] sm:$0xff]  ;;  %v1564_v29 = vld [vmem:[%s1512_s28 + $0x60] sm:$0xff]  ;;  %v328_v32 = vld [vmem:[%s1512_s28 + $0x30] sm:$0xff] }
  0x18   : > { %1258 = vmatprep.subr.bf16.mxu0 %v1257_v12  ;;  %1274 = vmatprep.subr.bf16.mxu1 %v1273_v21  ;;  %v1289_v30 = vpack.c.bf16 %v1564_v29, %v1561_v28  ;;  %v1182_v33 = vld [vmem:[%s1512_s28 + $0x68] sm:$0xff]  ;;  %v1402_v35 = vpack.i.bf16 %v328_v32, %v1561_v28  ;;  %v1579_v36 = vld [vmem:[%s1512_s28 + $0x98] sm:$0xff]  ;;  %v1582_v37 = vld [vmem:[%s1512_s28 + $0xa0] sm:$0xff] }
  0x19   : > { %1368 = vrot.lane.b32.xlu1 %v1367_v11, %s1448_s29  ;;  %1260 = vmatpush1.bf16.msra.mxu0 %v1259_v19  ;;  %v1574_v34 = vpack.c.bf16 %v1182_v33, %v328_v32  ;;  %v1407_v38 = vpack.i.bf16 %v1582_v37, %v1579_v36  ;;  %v1417_v39 = vpack.i.bf16 %v1182_v33, %v1564_v29  ;;  %v1191_v57 = vld [vmem:[%s1512_s28 + $0xb0] sm:$0xff]  ;;  %v1193_v21 = vld [vmem:[%s1512_s28 + $0xc0] sm:$0xff]  ;;  %v1196_v16 = vld [vmem:[%s1512_s28 + $0xd8] sm:$0xff] }
  0x1a   : > { %1358 = vrot.lane.b32.xlu0 %v1357_v13, %s1448_s29  ;;  %1276 = vmatpush1.bf16.msra.mxu1 %v1275_v20 }
  0x1d   : > { %1378 = vrot.lane.b32.xlu1 %v1377_v22, %s1449_s30  ;;  %v1192_v22 = vld [vmem:[%s1512_s28 + $0xb8] sm:$0xff] }
  0x1e   : > { %1373 = vrot.lane.b32.xlu0 %v1352_v7, %s1449_s30 }
  0x21   : > { %1388 = vrot.lane.b32.xlu1 %v1387_v25, %s1448_s29 }
  0x22   : > { %1383 = vrot.lane.b32.xlu0 %v1382_v26, %s1449_s30 }
  0x25   : > { %1398 = vrot.lane.b32.xlu1 %v1397_v27, %s1449_s30 }
  0x26   : > { %1393 = vrot.lane.b32.xlu0 %v1367_v11, %s1449_s30  ;;  %v1190_v11 = vld [vmem:[%s1512_s28 + $0xa8] sm:$0xff] }
  0x29   : > { %488 = vrot.lane.b32.xlu1 %v324_v4, %s1451_s7 }
  0x2a   : > { %486 = vrot.lane.b32.xlu0 %v323_v2, %s1451_s7 }
  0x2d   : > { %1403 = vrot.lane.b32.xlu1 %v1402_v35, %s1448_s29 }
  0x2e   : > { %484 = vrot.lane.b32.xlu0 %v322_v8, %s1451_s7 }
  0x31   : > { %492 = vrot.lane.b32.xlu1 %v1526_v6, %s1451_s7 }
  0x32   : > { %490 = vrot.lane.b32.xlu0 %v325_v5, %s1451_s7 }
  0x35   : > { %1413 = vrot.lane.b32.xlu1 %v1402_v35, %s1449_s30 }
  0x36   : > { %1408 = vrot.lane.b32.xlu0 %v1407_v38, %s1448_s29  ;;  %s1743_s29 = scalar_lea.vmem %s1809_s4, %s1322_s26 }
  0x39   : > { %494 = vrot.lane.b32.xlu1 %v1561_v28, %s1451_s7  ;;  %v513_v28 = vld [vmem:[%s1806_s1 + $0x8] sm:$0xff] }
  0x3a   : > { %1418 = vrot.lane.b32.xlu0 %v1417_v39, %s1449_s30 }
  0x3d   : > { %518 = vperm.xlu1 %1422, %v514_v40  }
  0x3e   : > { %496 = vrot.lane.b32.xlu0 %v328_v32, %s1451_s7 }
  0x42   : > { %523 = vperm.xlu0 %1423, %v515_v42  }
  0x87   : > { %v1364_v43 = vpop.permute.xlu1 %1363 }
  0x88   : > { %v1354_v44 = vpop.permute.xlu0 %1353  ;;  %v1365_v47 = vunpack.i.l.bf16 %v1364_v43  ;;  %v1366_v54 = vunpack.i.h.bf16 %v1364_v43 }
  0x89   : > { %v1356_v45 = vunpack.i.h.bf16 %v1354_v44  ;;  %v1355_v46 = vunpack.i.l.bf16 %v1354_v44 }
  0x8b   : > { %v1598_v48 = vpop.permute.xlu1 %1368  ;;  %v376_v49 = vsel %vm374_vm0, %v1355_v46, %v1356_v45 }
  0x8c   : > { %v1371_v50 = vunpack.i.h.bf16 %v1598_v48  ;;  %v1370_v51 = vunpack.i.l.bf16 %v1598_v48  ;;  %v1359_v52 = vpop.permute.xlu0 %1358  ;;  %v1261_v53 = vpack.c.bf16 %v1530_v9, %v376_v49 }
  0x8d   : > { %v1361_v55 = vunpack.i.h.bf16 %v1359_v52  ;;  %v1360_v56 = vunpack.i.l.bf16 %v1359_v52 }
  0x8e   : > { %1262 = vmatprep.subr.bf16.mxu0 %v1261_v53  ;;  %v378_v58 = vsel %vm374_vm0, %v1370_v51, %v1371_v50  ;;  %v377_v59 = vsel %vm374_vm0, %v1356_v45, %v1370_v51 }
  0x8f   : > { %v1379_v60 = vpop.permute.xlu1 %1378  ;;  %v375_v61 = vsel %vm374_vm0, %v1360_v56, %v1355_v46  ;;  %v1277_v62 = vpack.c.bf16 %v1548_v23, %v378_v58  ;;  %v410_v63 = vsel %vm374_vm0, %v1361_v55, %v1365_v47  ;;  %v1279_v2 = vpack.c.bf16 %v1518_v1, %v377_v59 }
  0x90   : > { %v1381_v3 = vunpack.i.h.bf16 %v1379_v60  ;;  %v1380_v4 = vunpack.i.l.bf16 %v1379_v60  ;;  %v1374_v5 = vpop.permute.xlu0 %1373  ;;  %v1263_v7 = vpack.c.bf16 %v1515_v0, %v375_v61  ;;  %v1265_v8 = vpack.c.bf16 %v410_v63, %v1191_v57  ;;  %v1650_v61 = vld [vmem:[%s1806_s1] sm:$0xff] }
  0x91   : > { %v1376_v9 = vunpack.i.h.bf16 %v1374_v5  ;;  %v1375_v10 = vunpack.i.l.bf16 %v1374_v5  ;;  %1278 = vmatprep.subr.bf16.mxu1 %v1277_v62  ;;  %v409_v12 = vsel %vm374_vm0, %v1366_v54, %v1361_v55 }
  0x92   : > { %1264 = vmatpush1.bf16.msra.mxu0 %v1263_v7  ;;  %1280 = vmatpush1.bf16.msra.mxu1 %v1279_v2  ;;  %v472_v13 = vsel %vm436_vm1, %v1380_v4, %v1381_v3  ;;  %v1267_v19 = vpack.c.bf16 %v409_v12, %v1190_v11  ;;  %v1194_v7 = vld [vmem:[%s1512_s28 + $0xc8] sm:$0xff] }
  0x93   : > { %1266 = vmatprep.subr.bf16.mxu0 %v1265_v8  ;;  %v1617_v1 = vpop.permute.xlu1 %1388  ;;  %v438_v14 = vsel %vm436_vm1, %v1375_v10, %v1376_v9 }
  0x94   : > { %v1391_v0 = vunpack.i.h.bf16 %v1617_v1  ;;  %v1390_v15 = vunpack.i.l.bf16 %v1617_v1  ;;  %v1384_v17 = vpop.permute.xlu0 %1383  ;;  %v1269_v20 = vpack.c.bf16 %v472_v13, %v438_v14 }
  0x95   : > { %v1386_v23 = vunpack.i.h.bf16 %v1384_v17  ;;  %v1385_v25 = vunpack.i.l.bf16 %v1384_v17 }
  0x96   : > { %1268 = vmatpush1.bf16.msra.mxu0 %v1267_v19  ;;  %v412_v26 = vsel %vm374_vm0, %v1390_v15, %v1391_v0  ;;  %v411_v27 = vsel %vm374_vm0, %v1365_v47, %v1390_v15 }
  0x97   : > { %1270 = vmatprep.subr.bf16.mxu0 %v1269_v20  ;;  %v1628_v32 = vpop.permute.xlu1 %1398  ;;  %v437_v33 = vsel %vm436_vm1, %v1385_v25, %v1375_v10  ;;  %v471_v35 = vsel %vm436_vm1, %v1386_v23, %v1380_v4  ;;  %v1281_v38 = vpack.c.bf16 %v412_v26, %v1193_v21  ;;  %v1283_v39 = vpack.c.bf16 %v411_v27, %v1192_v22 }
  0x98   : > { %v1401_v40 = vunpack.i.h.bf16 %v1628_v32  ;;  %v1400_v41 = vunpack.i.l.bf16 %v1628_v32  ;;  %v1634_v42 = vpop.permute.xlu0 %1393  ;;  %v1271_v43 = vpack.c.bf16 %v471_v35, %v437_v33  ;;  %v894_v33 = vlaneseq }
  0x99   : > { %v1396_v44 = vunpack.i.h.bf16 %v1634_v42  ;;  %v1395_v45 = vunpack.i.l.bf16 %v1634_v42  ;;  %1282 = vmatprep.subr.bf16.mxu1 %v1281_v38 }
  0x9a   : > { %1272 = vmatpush1.bf16.msra.mxu0 %v1271_v43  ;;  %1284 = vmatpush1.bf16.msra.mxu1 %v1283_v39  ;;  %v474_v46 = vsel %vm436_vm1, %v1400_v41, %v1401_v40  ;;  %v473_v47 = vsel %vm436_vm1, %v1381_v3, %v1400_v41  ;;  %v1720_v35 = vshrl.u32 %v894_v33, 7  ;;  %v1726_v39 = vld [vmem:[%s1808_s3] sm:$0x7f] }
  0x9b   : > { %v489_v49 = vpop.permute.xlu1 %488  ;;  %v440_v51 = vsel %vm436_vm1, %v1395_v45, %v1396_v44  ;;  %v439_v52 = vsel %vm436_vm1, %v1376_v9, %v1395_v45 }
  0x9c   : > { %v487_v53 = vpop.permute.xlu0 %486  ;;  %v1285_v54 = vpack.c.bf16 %v474_v46, %v440_v51  ;;  %v1287_v55 = vpack.c.bf16 %v473_v47, %v439_v52  ;;  %v896_v38 = vsub.s32 0, %v1720_v35  ;;  %v904_v45 = vsub.s32 2, %v1720_v35 }
  0x9d   : > { %v500_v56 = vsel %vm498_vm2, %v487_v53, %v489_v49  ;;  %v920_v33 = vsub.s32 6, %v1720_v35 }
  0x9e   : > { %549 = vmatprep.subr.mxu0 %v500_v56  ;;  %1286 = vmatprep.subr.bf16.mxu1 %v1285_v54  ;;  %v897_v42 = vrot.slane %v1726_v39, %v896_v38  ;;  %v905_v56 = vrot.slane %v1726_v39, %v904_v45 }
  0x9f   : > { %1288 = vmatpush1.bf16.msra.mxu1 %v1287_v55  ;;  %v1404_v57 = vpop.permute.xlu1 %1403 }
  0xa0   : > { %v1406_v58 = vunpack.i.h.bf16 %v1404_v57  ;;  %v1405_v59 = vunpack.i.l.bf16 %v1404_v57  ;;  %v485_v60 = vpop.permute.xlu0 %484 }
  0xa1   : > { %v499_v62 = vsel %vm498_vm2, %v485_v60, %v487_v53 }
  0xa2   : > { %550 = vmatpush1.msra.mxu0 %v499_v62  ;;  %v380_v63 = vsel %vm374_vm0, %v1405_v59, %v1406_v58  ;;  %v379_v2 = vsel %vm374_vm0, %v1371_v50, %v1405_v59  ;;  %v1309_v48 = vpack.c.bf16 %v1582_v37, %v1406_v58 }
  0xa3   : > { %1290 = vmatprep.subr.bf16.mxu0 %v1289_v30  ;;  %v493_v3 = vpop.permute.xlu1 %492  ;;  %1197 = vmatmul.mubr.msk.f32.vlgmr.msra.gmra.mrb[0].mxu0 %vm526_vm3, %v1650_v61  ;;  %v1293_v4 = vpack.c.bf16 %v1579_v36, %v380_v63  ;;  %v1295_v36 = vpack.c.bf16 %v1551_v24, %v379_v2  ;;  %v1195_v24 = vld [vmem:[%s1512_s28 + $0xd0] sm:$0xff] }
  0xa4   : > { %v491_v5 = vpop.permute.xlu0 %490  ;;  %1292 = vmatpush1.bf16.msra.mxu0 %v1291_v18  ;;  %603 = vmatprep.mubr.f32.mxu0 %v1450_v31 }
  0xa5   : > { %v502_v29 = vsel %vm498_vm2, %v491_v5, %v493_v3  ;;  %v501_v30 = vsel %vm498_vm2, %v489_v49, %v491_v5  ;;  %1294 = vmatprep.subr.bf16.mxu0 %v1293_v4  ;;  %v908_v49 = vsub.s32 3, %v1720_v35 }
  0xa6   : > { %626 = vmatprep.subr.mxu1 %v502_v29 }
  0xa7   : > { %627 = vmatpush1.msra.mxu1 %v501_v30  ;;  %v1414_v6 = vpop.permute.xlu1 %1413  ;;  %1198 = vmatmul.mubr.msk.f32.gmra.mrb[2].mxu0 %vm526_vm3, %v513_v28  ;;  %v909_v60 = vrot.slane %v1726_v39, %v908_v49 }
  0xa8   : > { %v1409_v18 = vpop.permute.xlu0 %1408  ;;  %1199 = vmatmul.mubr.msk.f32.vlgmr.msra.gmra.mrb[0].mxu1 %vm526_vm3, %v1650_v61  ;;  %1296 = vmatpush1.bf16.msra.mxu0 %v1295_v36  ;;  %v1416_v50 = vunpack.i.h.bf16 %v1414_v6  ;;  %v1415_v37 = vunpack.i.l.bf16 %v1414_v6 }
  0xa9   : > { %v1411_v8 = vunpack.i.h.bf16 %v1409_v18  ;;  %v1410_v9 = vunpack.i.l.bf16 %v1409_v18  ;;  %1306 = vmatprep.subr.bf16.mxu1 %v1574_v34  ;;  %680 = vmatprep.mubr.f32.mxu1 %v1450_v31 }
  0xaa   : > { %1308 = vmatpush3.bf16.msra.mxu1 %v1574_v34  ;;  %751 = vmatprep.mubr.f32.mxu0 %v1450_v31  ;;  %v442_v20 = vsel %vm436_vm1, %v1415_v37, %v1416_v50  ;;  %v441_v34 = vsel %vm436_vm1, %v1396_v44, %v1415_v37 }
  0xab   : > { %v1313_v10 = vpack.c.bf16 %v1411_v8, %v1196_v16  ;;  %v413_v11 = vsel %vm374_vm0, %v1391_v0, %v1410_v9  ;;  %1310 = vmatprep.subr.bf16.mxu1 %v1309_v48  ;;  %v414_v12 = vsel %vm374_vm0, %v1410_v9, %v1411_v8  ;;  %v495_v22 = vpop.permute.xlu1 %494 }
  0xac   : > { %v1299_v13 = vpack.c.bf16 %v413_v11, %v1194_v7  ;;  %v1419_v14 = vpop.permute.xlu0 %1418  ;;  %v1297_v15 = vpack.c.bf16 %v414_v12, %v1195_v24  ;;  %1200 = vmatmul.mubr.msk.f32.gmra.mrb[2].mxu1 %vm526_vm3, %v513_v28  ;;  %v503_v32 = vsel %vm498_vm2, %v493_v3, %v495_v22 }
  0xad   : > { %v1421_v17 = vunpack.i.h.bf16 %v1419_v14  ;;  %v1420_v19 = vunpack.i.l.bf16 %v1419_v14  ;;  %1254 = vmatprep.mubr.msk.f32.mxu1 %vm526_vm3, %v1650_v61 }
  0xae   : > { %1312 = vmatpush3.bf16.msra.mxu1 %v1309_v48  ;;  %1298 = vmatprep.subr.bf16.mxu0 %v1297_v15 }
  0xaf   : > { %v1317_v1 = vpack.c.bf16 %v1421_v17, %v1416_v50  ;;  %v475_v0 = vsel %vm436_vm1, %v1401_v40, %v1420_v19  ;;  %1314 = vmatprep.subr.bf16.mxu1 %v1313_v10  ;;  %1300 = vmatpush1.bf16.msra.mxu0 %v1299_v13  ;;  %v476_v21 = vsel %vm436_vm1, %v1420_v19, %v1421_v17  ;;  %v900_v40 = vsub.s32 1, %v1720_v35 }
  0xb0   : > { %v1303_v23 = vpack.c.bf16 %v475_v0, %v441_v34  ;;  %v1301_v25 = vpack.c.bf16 %v476_v21, %v442_v20  ;;  %v497_v26 = vpop.permute.xlu0 %496 }
  0xb1   : > { %v504_v27 = vsel %vm498_vm2, %v495_v22, %v497_v26  ;;  %v901_v44 = vrot.slane %v1726_v39, %v900_v40 }
  0xb2   : > { %1316 = vmatpush3.bf16.msra.mxu1 %v1313_v10  ;;  %1302 = vmatprep.subr.bf16.mxu0 %v1301_v25 }
  0xb3   : > { %1318 = vmatprep.subr.bf16.mxu1 %v1317_v1  ;;  %1304 = vmatpush1.bf16.msra.mxu0 %v1303_v23  ;;  %v912_v23 = vsub.s32 4, %v1720_v35 }
  0xb4   : > { %703 = vmatprep.subr.mxu0 %v504_v27  ;;  %v916_v27 = vsub.s32 5, %v1720_v35 }
  0xb5   : > { %v913_v38 = vrot.slane %v1726_v39, %v912_v23 }
  0xb6   : > { %1320 = vmatpush3.bf16.msra.mxu1 %v1317_v1 }
  0xb7   : > { %1252 = vmatprep.subr.mxu1 %v497_v26  ;;  %704 = vmatpush1.msra.mxu0 %v503_v32 }
  0xb8   : > { %1201 = vmatmul.mubr.msk.f32.vlgmr.msra.gmra.mrb[4].mxu0 %vm526_vm3, %v1650_v61 }
  0xb9   : > { %757 = vmatprep.mubr.f32.mxu0 %v1450_v31 }
  0xba   : > { %1253 = vmatpush3.msra.mxu1 %v497_v26 }
  0xbb   : > { %1255 = vmatmul.mubr.msk.f32.vlgmr.msra.gmra.mrb[4].mxu1 %vm526_vm3, %v513_v28 }
  0xbc   : > { %1202 = vmatmul.mubr.msk.f32.gmra.mrb[6].mxu0 %vm526_vm3, %v513_v28  ;;  %v1729_v41 = vpop.permute.xlu1 %518 }
  0xc1   : > { %v1738_v52 = vpop.permute.xlu0 %523 }
 0x176   : > { %v599_v43 = vpop.f32.mrb[0].mxu0 }
 0x177   : > { %v600_v46 = vadd.f32 %v599_v43, %v1729_v41  ;;  %v601_v47 = vpop.f32.mrb[1].mxu0 }
 0x178   : > { %v602_v51 = vadd.f32 %v601_v47, %v1729_v41 }
 0x179   : > { %v929_v53 = vmul.f32 %v897_v42, %v600_v46 }
 0x17a   : > { %v1217_v54 = vpack.c.bf16 %v602_v51, %v600_v46  ;;  %v930_v55 = vmul.f32 %v901_v44, %v602_v51  ;;  %v605_v57 = vpop.f32.mrb[2].mxu0 }
 0x17b   : > { %v971_v58 = vmul.f32 %v929_v53, %v600_v46  ;;  %v676_v59 = vpop.f32.mrb[0].mxu1  ;;  %v606_v61 = vadd.f32 %v605_v57, %v1738_v52  ;;  %v607_v62 = vpop.f32.mrb[3].mxu0  ;;  %v921_v46 = vrot.slane %v1726_v39, %v920_v33 }
 0x17c   : > { %883 = vst [vmem:[%s1743_s29] sm:$0xff] %v1217_v54  ;;  %v945_v63 = vadd.f32 %v930_v55, %v929_v53  ;;  %v972_v2 = vmul.f32 %v930_v55, %v602_v51  ;;  %v677_v3 = vadd.f32 %v676_v59, %v1729_v41  ;;  %v678_v4 = vpop.f32.mrb[1].mxu1  ;;  %v608_v5 = vadd.f32 %v607_v62, %v1738_v52 }
 0x17d   : > { %v679_v28 = vadd.f32 %v678_v4, %v1729_v41  ;;  %v936_v29 = vmul.f32 %v897_v42, %v606_v61  ;;  %v917_v42 = vrot.slane %v1726_v39, %v916_v27 }
 0x17e   : > { %v985_v30 = vadd.f32 %v972_v2, %v971_v58  ;;  %v931_v36 = vmul.f32 %v905_v56, %v677_v3  ;;  %v1221_v48 = vpack.c.bf16 %v608_v5, %v606_v61  ;;  %v937_v6 = vmul.f32 %v901_v44, %v608_v5 }
 0x17f   : > { %v1218_v16 = vpack.c.bf16 %v679_v28, %v677_v3  ;;  %v932_v18 = vmul.f32 %v909_v60, %v679_v28  ;;  %v978_v50 = vmul.f32 %v936_v29, %v606_v61  ;;  %v682_v7 = vpop.f32.mrb[2].mxu1 }
 0x180   : > { %v946_v8 = vadd.f32 %v945_v63, %v931_v36  ;;  %v973_v9 = vmul.f32 %v931_v36, %v677_v3  ;;  %888 = vst [vmem:[%s1743_s29 + $0x1c] sm:$0xff] %v1221_v48  ;;  %v955_v24 = vadd.f32 %v937_v6, %v936_v29  ;;  %v979_v37 = vmul.f32 %v937_v6, %v608_v5  ;;  %v684_v10 = vpop.f32.mrb[3].mxu1 }
 0x181   : > { %884 = vst [vmem:[%s1743_s29 + $0x8] sm:$0xff] %v1218_v16  ;;  %v974_v11 = vmul.f32 %v932_v18, %v679_v28  ;;  %v683_v12 = vadd.f32 %v682_v7, %v1738_v52  ;;  %v685_v13 = vadd.f32 %v684_v10, %v1738_v52 }
 0x182   : > { %v986_v14 = vadd.f32 %v985_v30, %v973_v9  ;;  %v947_v15 = vadd.f32 %v946_v8, %v932_v18  ;;  %v994_v17 = vadd.f32 %v979_v37, %v978_v50 }
 0x183   : > { %v938_v19 = vmul.f32 %v905_v56, %v683_v12  ;;  %v1222_v20 = vpack.c.bf16 %v685_v13, %v683_v12  ;;  %v939_v34 = vmul.f32 %v909_v60, %v685_v13 }
 0x184   : > { %v987_v1 = vadd.f32 %v986_v14, %v974_v11  ;;  %v943_v14 = vld [vmem:[%s1712_s19] sm:$0xff] }
 0x185   : > { %v956_v0 = vadd.f32 %v955_v24, %v938_v19  ;;  %v980_v21 = vmul.f32 %v938_v19, %v683_v12  ;;  %889 = vst [vmem:[%s1743_s29 + $0x24] sm:$0xff] %v1222_v20  ;;  %v981_v22 = vmul.f32 %v939_v34, %v685_v13  ;;  %v944_v19 = vld [vmem:[%s1712_s19 + $0x8] sm:$0xff]  ;;  %v969_v20 = vld [vmem:[%s312_s8] sm:$0xff] }
 0x187   : > { %v995_v25 = vadd.f32 %v994_v17, %v980_v21  ;;  %v957_v26 = vadd.f32 %v956_v0, %v939_v34 }
 0x189   : > { %v996_v32 = vadd.f32 %v995_v25, %v981_v22  ;;  %v970_v22 = vld [vmem:[%s312_s8 + $0x8] sm:$0xff] }
 0x18b   : > { %v753_v40 = vpop.f32.mrb[4].mxu0 }
 0x18c   : > { %v754_v43 = vadd.f32 %v753_v40, %v1729_v41  ;;  %v755_v44 = vpop.f32.mrb[5].mxu0 }
 0x18d   : > { %v756_v45 = vadd.f32 %v755_v44, %v1729_v41 }
 0x18e   : > { %v933_v47 = vmul.f32 %v913_v38, %v754_v43  ;;  %v1256_v49 = vpop.f32.mrb[4].mxu1 }
 0x18f   : > { %v1219_v51 = vpack.c.bf16 %v756_v45, %v754_v43  ;;  %v934_v53 = vmul.f32 %v917_v42, %v756_v45  ;;  %v836_v35 = vadd.f32 %v1256_v49, %v1738_v52  ;;  %v830_v54 = vpop.f32.mrb[5].mxu1  ;;  %v759_v55 = vpop.f32.mrb[6].mxu0 }
 0x190   : > { %v975_v56 = vmul.f32 %v933_v47, %v754_v43  ;;  %v831_v57 = vadd.f32 %v830_v54, %v1729_v41  ;;  %v760_v58 = vadd.f32 %v759_v55, %v1738_v52  ;;  %v761_v59 = vpop.f32.mrb[7].mxu0  ;;  %v948_v60 = vadd.f32 %v947_v15, %v933_v47 }
 0x191   : > { %885 = vst [vmem:[%s1743_s29 + $0x10] sm:$0xff] %v1219_v51  ;;  %v976_v39 = vmul.f32 %v934_v53, %v756_v45  ;;  %v1224_v61 = vpack.c.bf16 %v836_v35, %v836_v35  ;;  %v762_v62 = vadd.f32 %v761_v59, %v1738_v52  ;;  %v942_v63 = vmul.f32 %v921_v46, %v836_v35 }
 0x192   : > { %v1220_v2 = vpack.c.bf16 %v831_v57, %v831_v57  ;;  %v940_v3 = vmul.f32 %v913_v38, %v760_v58  ;;  %v935_v4 = vmul.f32 %v921_v46, %v831_v57  ;;  %v949_v5 = vadd.f32 %v948_v60, %v934_v53 }
 0x193   : > { %891 = vst.msk [vmem:[%s1743_s29 + $0x34] sm:$0xf] %vm886_vm5, %v1224_v61  ;;  %v1223_v28 = vpack.c.bf16 %v762_v62, %v760_v58  ;;  %v941_v41 = vmul.f32 %v917_v42, %v762_v62  ;;  %v988_v29 = vadd.f32 %v987_v1, %v975_v56  ;;  %v984_v50 = vmul.f32 %v942_v63, %v836_v35 }
 0x194   : > { %887 = vst.msk [vmem:[%s1743_s29 + $0x18] sm:$0xf] %vm886_vm5, %v1220_v2  ;;  %v982_v30 = vmul.f32 %v940_v3, %v760_v58  ;;  %v951_v36 = vsel %vm950_vm6, %v935_v4, 0.0  ;;  %v958_v48 = vadd.f32 %v957_v26, %v940_v3  ;;  %v977_v6 = vmul.f32 %v935_v4, %v831_v57 }
 0x195   : > { %890 = vst [vmem:[%s1743_s29 + $0x2c] sm:$0xff] %v1223_v28  ;;  %v983_v16 = vmul.f32 %v941_v41, %v762_v62  ;;  %v952_v52 = vadd.f32 %v951_v36, %v949_v5  ;;  %v989_v18 = vadd.f32 %v988_v29, %v976_v39  ;;  %v960_v24 = vsel %vm950_vm6, %v942_v63, 0.0 }
 0x196   : > { %v959_v7 = vadd.f32 %v958_v48, %v941_v41  ;;  %v990_v8 = vsel %vm950_vm6, %v977_v6, 0.0  ;;  %v997_v9 = vadd.f32 %v996_v32, %v982_v30  ;;  %v999_v12 = vsel %vm950_vm6, %v984_v50, 0.0 }
 0x197   : > { %953 = vadd.xlane.f32.xlu1 %v952_v52  ;;  %v991_v37 = vadd.f32 %v990_v8, %v989_v18 }
 0x198   : > { %v961_v10 = vadd.f32 %v960_v24, %v959_v7  ;;  %v998_v11 = vadd.f32 %v997_v9, %v983_v16 }
 0x19a   : > { %962 = vadd.xlane.f32.xlu0 %v961_v10  ;;  %v1000_v13 = vadd.f32 %v999_v12, %v998_v11 }
 0x19b   : > { %992 = vadd.xlane.f32.xlu1 %v991_v37 }
 0x19e   : > { %1001 = vadd.xlane.f32.xlu0 %v1000_v13 }
 0x224   : > { %v954_v15 = vpop.xlane.xlu1 %953 }
 0x225   : > { %v964_v17 = vadd.f32 %v954_v15, %v943_v14 }
 0x227   : > { %967 = vst.msk [vmem:[%s1712_s19] sm:$0xff] %vm317_vm4, %v964_v17  ;;  %v963_v34 = vpop.xlane.xlu0 %962 }
 0x228   : > { %v965_v1 = vadd.f32 %v963_v34, %v944_v19  ;;  %v993_v0 = vpop.xlane.xlu1 %992 }
 0x229   : > { %v1003_v21 = vadd.f32 %v993_v0, %v969_v20 }
 0x22a   : > { %968 = vst.msk [vmem:[%s1712_s19 + $0x8] sm:$0xff] %vm317_vm4, %v965_v1 }
 0x22b   : > { %1005 = vst.msk [vmem:[%s312_s8] sm:$0xff] %vm317_vm4, %v1003_v21  ;;  %v1002_v23 = vpop.xlane.xlu0 %1001 }
 0x22c   : > { %v1004_v25 = vadd.f32 %v1002_v23, %v970_v22 }
 0x22e   : > { %1006 = vst.msk [vmem:[%s312_s8 + $0x8] sm:$0xff] %vm317_vm4, %v1004_v25 }
 0x22f PF: > { %s17_s23 = sadd.s32 1, %s1446_s23   ;;  %s1812_s21 = smov %s1442_s22 }
 0x230   : > { %p14_p5 = scmp.ge.s32.totalorder %s17_s23, 4   ;;  %s1813_s22 = smov %s1815_s24 }
 0x232   :  { %16 = sbr.rel (!%p14_p5) target bundleno = 2 (0x2), region = 97 }

// kernel: down_pallas.3
= control target key start
LH: loop header
LB: loop body
LE: loop exit
PB: predicated region body
PF: predicated region fallthrough
CT: control target
= control target key end

     0   :  { %s2139_s12 = smov 0   ;;  %s2141_s13 = smov 0   ;;  %s3553_s0 = inlined_call_operand.vmem [shape: bf16[2,1,16,8,8,8], index: 0, kind: input, shape index: {}]   ;;  %s3554_s1 = inlined_call_operand.vmem [shape: f32[2,16,1,1,1], index: 1, kind: input, shape index: {}]   ;;  %s3555_s2 = inlined_call_operand.vmem [shape: f32[2,16,1,1,1], index: 2, kind: input, shape index: {}]   ;;  %s3556_s3 = inlined_call_operand.vmem [shape: f32[2,16,8,8,8], index: 3, kind: output, shape index: {}]  }
   0x1   :  { %s2143_s14 = smov 0  }
   0x2 LB: > { %s25_s15 = sadd.s32 1, %s2112_s13  ;;  %p1705_p0 = scmp.ge.s32.totalorder %s2116_s14, 1  ;;  %s2116_s14 = sphi %s2143_s14, %s13_s14   ;;  %s2112_s13 = sphi %s2141_s13, %s3898_s13   ;;  %s2108_s12 = sphi %s2139_s12, %s3897_s12  }
   0x3   : > { %p27_p1 = scmp.ge.s32.totalorder %s25_s15, 2  ;;  %p175_p2 = scmp.lt.s32.totalorder %s2116_s14, 3 }
   0x5   : > { %s3900_s15 = smov (%p27_p1, %s25_s15), 0  ;;  %p176_p3 = pnand %p1705_p0, %p175_p2 }
   0x7   : > { %179 = sbr.rel (%p176_p3) target bundleno = 349 (0x15d), region = 32 }
   0xe   : > { %p215_p4 = scmp.lt.s32.totalorder %s2108_s12, 1  ;;  %v2118_v0 = vmov 0   ;;  %vm1458_vm0 = vcmask 64512  }
   0xf   : > { %2093 = vset.pattern.permute.xlu1 %v2118_v0  ;;  %2092 = vset.pattern.permute.xlu0 %v2118_v0 }
  0x10   : > { %s3902_s12 = smov (!%p215_p4, %s2108_s12), 1 }
  0x11   : > { %s1708_s16 = sshll.u32 %s3902_s12, 4  ;;  %s1746_s23 = sshll.u32 %s3902_s12, 9 }
  0x12   : > { %s227_s19 = scalar_lea.vmem %s3554_s1, %s1708_s16  ;;  %s2170_s22 = scalar_lea.vmem %s3555_s2, %s1708_s16 }
  0x13   : > { %v1714_v1 = vld [vmem:[%s227_s19 + $0x2] ss:$0 sm:$0xff]  ;;  %v1712_v2 = vld [vmem:[%s227_s19] ss:$0 sm:$0xff]  ;;  %v1715_v3 = vld [vmem:[%s227_s19 + $0x3] ss:$0 sm:$0xff]  ;;  %s2192_s26 = scalar_lea.vmem %s3553_s0, %s1746_s23 }
  0x14   : > { %603 = vperm.xlu1 %2093, %v1714_v1   ;;  %595 = vperm.xlu0 %2092, %v1712_v2   ;;  %v1713_v4 = vld [vmem:[%s227_s19 + $0x1] ss:$0 sm:$0xff]  ;;  %v1717_v5 = vld [vmem:[%s227_s19 + $0x5] ss:$0 sm:$0xff]  ;;  %v1716_v6 = vld [vmem:[%s227_s19 + $0x4] ss:$0 sm:$0xff] }
  0x15   : > { %v1719_v7 = vld [vmem:[%s227_s19 + $0x7] ss:$0 sm:$0xff]  ;;  %v1718_v8 = vld [vmem:[%s227_s19 + $0x6] ss:$0 sm:$0xff]  ;;  %v1721_v9 = vld [vmem:[%s227_s19 + $0x9] ss:$0 sm:$0xff] }
  0x16   : > { %v1720_v10 = vld [vmem:[%s227_s19 + $0x8] ss:$0 sm:$0xff]  ;;  %v1723_v11 = vld [vmem:[%s227_s19 + $0xb] ss:$0 sm:$0xff]  ;;  %v1722_v12 = vld [vmem:[%s227_s19 + $0xa] ss:$0 sm:$0xff] }
  0x17   : > { %v1725_v13 = vld [vmem:[%s227_s19 + $0xd] ss:$0 sm:$0xff]  ;;  %v1724_v14 = vld [vmem:[%s227_s19 + $0xc] ss:$0 sm:$0xff]  ;;  %v1727_v15 = vld [vmem:[%s227_s19 + $0xf] ss:$0 sm:$0xff] }
  0x18   : > { %607 = vperm.xlu1 %2093, %v1715_v3   ;;  %599 = vperm.xlu0 %2092, %v1713_v4   ;;  %v1726_v16 = vld [vmem:[%s227_s19 + $0xe] ss:$0 sm:$0xff]  ;;  %v1729_v17 = vld [vmem:[%s2170_s22 + $0x1] ss:$0 sm:$0xff]  ;;  %v1728_v18 = vld [vmem:[%s2170_s22] ss:$0 sm:$0xff] }
  0x19   : > { %v1731_v19 = vld [vmem:[%s2170_s22 + $0x3] ss:$0 sm:$0xff]  ;;  %v1730_v20 = vld [vmem:[%s2170_s22 + $0x2] ss:$0 sm:$0xff]  ;;  %v1733_v21 = vld [vmem:[%s2170_s22 + $0x5] ss:$0 sm:$0xff] }
  0x1a   : > { %v1732_v22 = vld [vmem:[%s2170_s22 + $0x4] ss:$0 sm:$0xff]  ;;  %v1735_v23 = vld [vmem:[%s2170_s22 + $0x7] ss:$0 sm:$0xff]  ;;  %v1734_v24 = vld [vmem:[%s2170_s22 + $0x6] ss:$0 sm:$0xff] }
  0x1b   : > { %v1737_v25 = vld [vmem:[%s2170_s22 + $0x9] ss:$0 sm:$0xff]  ;;  %v1736_v26 = vld [vmem:[%s2170_s22 + $0x8] ss:$0 sm:$0xff]  ;;  %v1739_v27 = vld [vmem:[%s2170_s22 + $0xb] ss:$0 sm:$0xff] }
  0x1c   : > { %615 = vperm.xlu1 %2093, %v1717_v5   ;;  %611 = vperm.xlu0 %2092, %v1716_v6   ;;  %v1738_v28 = vld [vmem:[%s2170_s22 + $0xa] ss:$0 sm:$0xff]  ;;  %v1741_v29 = vld [vmem:[%s2170_s22 + $0xd] ss:$0 sm:$0xff]  ;;  %v1740_v30 = vld [vmem:[%s2170_s22 + $0xc] ss:$0 sm:$0xff] }
  0x1d   : > { %v1743_v31 = vld [vmem:[%s2170_s22 + $0xf] ss:$0 sm:$0xff]  ;;  %v1742_v32 = vld [vmem:[%s2170_s22 + $0xe] ss:$0 sm:$0xff]  ;;  %v2195_v33 = vld [vmem:[%s2192_s26 + $0x40] sm:$0xff]   ;;  %s1747_s27 = sshll.u32 %s3902_s12, 10 }
  0x1e   : > { %v2198_v34 = vld [vmem:[%s2192_s26 + $0x48] sm:$0xff]   ;;  %v2201_v35 = vld [vmem:[%s2192_s26 + $0x50] sm:$0xff]   ;;  %v2204_v36 = vld [vmem:[%s2192_s26 + $0x58] sm:$0xff]   ;;  %s3038_s30 = scalar_lea.vmem %s3556_s3, %s1747_s27 }
  0x1f   : > { %v2207_v37 = vld [vmem:[%s2192_s26] sm:$0xff]   ;;  %v2210_v38 = vld [vmem:[%s2192_s26 + $0x8] sm:$0xff]   ;;  %v2217_v43 = vld [vmem:[%s2192_s26 + $0x10] sm:$0xff]   ;;  %v3604_v42 = vunpack.c.l.bf16 %v2201_v35  ;;  %v3606_v48 = vunpack.c.h.bf16 %v2201_v35 }
  0x20   : > { %623 = vperm.xlu1 %2093, %v1719_v7   ;;  %619 = vperm.xlu0 %2092, %v1718_v8   ;;  %v2220_v44 = vld [vmem:[%s2192_s26 + $0x18] sm:$0xff]   ;;  %v2227_v49 = vld [vmem:[%s2192_s26 + $0x60] sm:$0xff]   ;;  %v2230_v50 = vld [vmem:[%s2192_s26 + $0x68] sm:$0xff]   ;;  %v3614_v35 = vunpack.c.l.bf16 %v2210_v38 }
  0x21   : > { %v2237_v55 = vld [vmem:[%s2192_s26 + $0x70] sm:$0xff]   ;;  %v2240_v56 = vld [vmem:[%s2192_s26 + $0x78] sm:$0xff]   ;;  %v2247_v61 = vld [vmem:[%s2192_s26 + $0x20] sm:$0xff]  }
  0x22   : > { %v2250_v62 = vld [vmem:[%s2192_s26 + $0x28] sm:$0xff]   ;;  %v2257_v3 = vld [vmem:[%s2192_s26 + $0x30] sm:$0xff]   ;;  %v2260_v4 = vld [vmem:[%s2192_s26 + $0x38] sm:$0xff]  }
  0x23   : > { %v2360_v7 = vld [vmem:[%s2192_s26 + $0x138] sm:$0xff]   ;;  %v2370_v5 = vld [vmem:[%s2192_s26 + $0x108] sm:$0xff]   ;;  %v2417_v8 = vld [vmem:[%s2192_s26 + $0x150] sm:$0xff]  }
  0x24   : > { %631 = vperm.xlu1 %2093, %v1721_v9   ;;  %627 = vperm.xlu0 %2092, %v1720_v10   ;;  %v2267_v9 = vld [vmem:[%s2192_s26 + $0xa0] sm:$0xff]   ;;  %v2270_v10 = vld [vmem:[%s2192_s26 + $0xa8] sm:$0xff]   ;;  %v2380_v1 = vld [vmem:[%s2192_s26 + $0x118] sm:$0xff]  }
  0x25   : > { %v2390_v63 = vld [vmem:[%s2192_s26 + $0x168] sm:$0xff]   ;;  %v2400_v59 = vld [vmem:[%s2192_s26 + $0x178] sm:$0xff]   ;;  %v2427_v6 = vld [vmem:[%s2192_s26 + $0x1a0] sm:$0xff]  }
  0x26   : > { %v2410_v57 = vld [vmem:[%s2192_s26 + $0x148] sm:$0xff]   ;;  %v2420_v53 = vld [vmem:[%s2192_s26 + $0x158] sm:$0xff]   ;;  %3584 = vst [vmem:[#allocation3_spill] sm:$0xff] %v2427_v6  ;;  %v2437_v2 = vld [vmem:[%s2192_s26 + $0x1b0] sm:$0xff]  }
  0x27   : > { %3583 = vst [vmem:[#allocation2_spill] sm:$0xff] %v2420_v53  ;;  %v2430_v51 = vld [vmem:[%s2192_s26 + $0x1a8] sm:$0xff]   ;;  %3586 = vst [vmem:[#allocation5_spill] sm:$0xff] %v2437_v2  ;;  %v2440_v47 = vld [vmem:[%s2192_s26 + $0x1b8] sm:$0xff]  }
  0x28   : > { %639 = vperm.xlu1 %2093, %v1723_v11   ;;  %635 = vperm.xlu0 %2092, %v1722_v12   ;;  %v2350_v11 = vld [vmem:[%s2192_s26 + $0x128] sm:$0xff]   ;;  %v2407_v12 = vld [vmem:[%s2192_s26 + $0x140] sm:$0xff]   ;;  %3585 = vst [vmem:[#allocation4_spill] sm:$0xff] %v2430_v51  ;;  %3587 = vst [vmem:[#allocation6_spill] sm:$0xff] %v2440_v47  ;;  %v3598_v51 = vunpack.c.h.bf16 %v2195_v33 }
  0x29   : > { %v2447_v0 = vld [vmem:[%s2192_s26 + $0x180] sm:$0xff]   ;;  %v2450_v45 = vld [vmem:[%s2192_s26 + $0x188] sm:$0xff]   ;;  %v2457_v60 = vld [vmem:[%s2192_s26 + $0x190] sm:$0xff]  }
  0x2a   : > { %3588 = vst [vmem:[#allocation7_spill] sm:$0xff] %v2447_v0  ;;  %3589 = vst [vmem:[#allocation8_spill] sm:$0xff] %v2450_v45  ;;  %v2460_v41 = vld [vmem:[%s2192_s26 + $0x198] sm:$0xff]   ;;  %v2467_v58 = vld [vmem:[%s2192_s26 + $0x1e0] sm:$0xff]   ;;  %v3600_v0 = vunpack.c.l.bf16 %v2198_v34 }
  0x2b   : > { %3590 = vst [vmem:[#allocation9_spill] sm:$0xff] %v2457_v60  ;;  %3591 = vst [vmem:[#allocation10_spill] sm:$0xff] %v2460_v41  ;;  %v2470_v39 = vld [vmem:[%s2192_s26 + $0x1e8] sm:$0xff]   ;;  %v2477_v54 = vld [vmem:[%s2192_s26 + $0x1f0] sm:$0xff]   ;;  %v3596_v41 = vunpack.c.l.bf16 %v2195_v33  ;;  %v3602_v60 = vunpack.c.h.bf16 %v2198_v34  ;;  %v3608_v33 = vunpack.c.l.bf16 %v2204_v36  ;;  %v3612_v34 = vunpack.c.l.bf16 %v2207_v37 }
  0x2c   : > { %647 = vperm.xlu1 %2093, %v1725_v13   ;;  %643 = vperm.xlu0 %2092, %v1724_v14   ;;  %v2340_v13 = vld [vmem:[%s2192_s26 + $0xd8] sm:$0xff]   ;;  %v2397_v14 = vld [vmem:[%s2192_s26 + $0x170] sm:$0xff]   ;;  %3592 = vst [vmem:[#allocation11_spill] sm:$0xff] %v2467_v58  ;;  %3593 = vst [vmem:[#allocation12_spill] sm:$0xff] %v2470_v39 }
  0x2d   : > { %v2480_v2 = vld [vmem:[%s2192_s26 + $0x1f8] sm:$0xff]   ;;  %v2487_v6 = vld [vmem:[%s2192_s26 + $0x1c0] sm:$0xff]   ;;  %v2490_v52 = vld [vmem:[%s2192_s26 + $0x1c8] sm:$0xff]  }
  0x2e   : > { %3594 = vst [vmem:[#allocation13_spill] sm:$0xff] %v2480_v2  ;;  %3595 = vst [vmem:[#allocation14_spill] sm:$0xff] %v2490_v52  ;;  %v2497_v53 = vld [vmem:[%s2192_s26 + $0x1d0] sm:$0xff]   ;;  %v2500_v40 = vld [vmem:[%s2192_s26 + $0x1d8] sm:$0xff]  }
  0x30   : > { %655 = vperm.xlu1 %2093, %v1727_v15   ;;  %651 = vperm.xlu0 %2092, %v1726_v16   ;;  %v2277_v15 = vld [vmem:[%s2192_s26 + $0xb0] sm:$0xff]   ;;  %v2280_v16 = vld [vmem:[%s2192_s26 + $0xb8] sm:$0xff]  }
  0x34   : > { %887 = vperm.xlu1 %2093, %v1729_v17   ;;  %883 = vperm.xlu0 %2092, %v1728_v18   ;;  %v2330_v17 = vld [vmem:[%s2192_s26 + $0xc8] sm:$0xff]   ;;  %v2387_v18 = vld [vmem:[%s2192_s26 + $0x160] sm:$0xff]  }
  0x38   : > { %895 = vperm.xlu1 %2093, %v1731_v19   ;;  %891 = vperm.xlu0 %2092, %v1730_v20   ;;  %v2320_v19 = vld [vmem:[%s2192_s26 + $0xf8] sm:$0xff]   ;;  %v2377_v20 = vld [vmem:[%s2192_s26 + $0x110] sm:$0xff]  }
  0x3c   : > { %903 = vperm.xlu1 %2093, %v1733_v21   ;;  %899 = vperm.xlu0 %2092, %v1732_v22   ;;  %v2287_v21 = vld [vmem:[%s2192_s26 + $0x80] sm:$0xff]   ;;  %v2290_v22 = vld [vmem:[%s2192_s26 + $0x88] sm:$0xff]  }
  0x40   : > { %911 = vperm.xlu1 %2093, %v1735_v23   ;;  %907 = vperm.xlu0 %2092, %v1734_v24   ;;  %v2307_v24 = vld [vmem:[%s2192_s26 + $0xe0] sm:$0xff]   ;;  %v2310_v23 = vld [vmem:[%s2192_s26 + $0xe8] sm:$0xff]  }
  0x44   : > { %919 = vperm.xlu1 %2093, %v1737_v25   ;;  %915 = vperm.xlu0 %2092, %v1736_v26   ;;  %v2327_v25 = vld [vmem:[%s2192_s26 + $0xc0] sm:$0xff]   ;;  %v2357_v26 = vld [vmem:[%s2192_s26 + $0x130] sm:$0xff]  }
  0x48   : > { %927 = vperm.xlu1 %2093, %v1739_v27   ;;  %923 = vperm.xlu0 %2092, %v1738_v28   ;;  %v2297_v27 = vld [vmem:[%s2192_s26 + $0x90] sm:$0xff]   ;;  %v2300_v28 = vld [vmem:[%s2192_s26 + $0x98] sm:$0xff]  }
  0x4c   : > { %935 = vperm.xlu1 %2093, %v1741_v29   ;;  %931 = vperm.xlu0 %2092, %v1740_v30   ;;  %v2317_v30 = vld [vmem:[%s2192_s26 + $0xf0] sm:$0xff]   ;;  %v2347_v29 = vld [vmem:[%s2192_s26 + $0x120] sm:$0xff]  }
  0x50   : > { %943 = vperm.xlu1 %2093, %v1743_v31   ;;  %939 = vperm.xlu0 %2092, %v1742_v32   ;;  %v2337_v31 = vld [vmem:[%s2192_s26 + $0xd0] sm:$0xff]   ;;  %v2367_v32 = vld [vmem:[%s2192_s26 + $0x100] sm:$0xff]  }
  0x93   : > { %v604_v39 = vpop.permute.xlu1 %603  ;;  %v596_v58 = vpop.permute.xlu0 %595 }
  0x94   : > { %v2516_v2 = vmul.f32 %v3596_v41, %v604_v39  ;;  %v2520_v46 = vmul.f32 %v3598_v51, %v604_v39  ;;  %v2524_v45 = vmul.f32 %v3600_v0, %v604_v39  ;;  %v2528_v52 = vmul.f32 %v3602_v60, %v604_v39 }
  0x95   : > { %v2532_v47 = vmul.f32 %v3604_v42, %v604_v39  ;;  %v2536_v41 = vmul.f32 %v3606_v48, %v604_v39  ;;  %v2540_v51 = vmul.f32 %v3608_v33, %v604_v39  ;;  %v2548_v60 = vmul.f32 %v3612_v34, %v596_v58 }
  0x96   : > { %3597 = vst [vmem:[#allocation15_spill] sm:$0xff] %v2516_v2  ;;  %3599 = vst [vmem:[#allocation16_spill] sm:$0xff] %v2520_v46  ;;  %v3610_v46 = vunpack.c.h.bf16 %v2204_v36  ;;  %v2556_v48 = vmul.f32 %v3614_v35, %v596_v58  ;;  %v3616_v36 = vunpack.c.l.bf16 %v2217_v43 }
  0x97   : > { %3601 = vst [vmem:[#allocation17_spill] sm:$0xff] %v2524_v45  ;;  %3603 = vst [vmem:[#allocation18_spill] sm:$0xff] %v2528_v52  ;;  %v3613_v52 = vunpack.c.h.bf16 %v2207_v37  ;;  %v3618_v37 = vunpack.c.l.bf16 %v2220_v44 }
  0x98   : > { %3605 = vst [vmem:[#allocation19_spill] sm:$0xff] %v2532_v47  ;;  %3607 = vst [vmem:[#allocation20_spill] sm:$0xff] %v2536_v41  ;;  %v2544_v0 = vmul.f32 %v3610_v46, %v604_v39  ;;  %v3615_v41 = vunpack.c.h.bf16 %v2210_v38  ;;  %v2564_v39 = vmul.f32 %v3616_v36, %v596_v58  ;;  %v3617_v46 = vunpack.c.h.bf16 %v2217_v43  ;;  %v600_v38 = vpop.permute.xlu0 %599 }
  0x99   : > { %3609 = vst [vmem:[#allocation21_spill] sm:$0xff] %v2540_v51  ;;  %v2552_v42 = vmul.f32 %v3613_v52, %v596_v58  ;;  %v2572_v52 = vmul.f32 %v3618_v37, %v596_v58  ;;  %v608_v51 = vpop.permute.xlu1 %607  ;;  %v3622_v36 = vunpack.c.h.bf16 %v2227_v49  ;;  %v3624_v43 = vunpack.c.l.bf16 %v2230_v50 }
  0x9a   : > { %3611 = vst [vmem:[#allocation22_spill] sm:$0xff] %v2544_v0  ;;  %v2560_v33 = vmul.f32 %v3615_v41, %v596_v58  ;;  %v2568_v34 = vmul.f32 %v3617_v46, %v596_v58  ;;  %v3619_v0 = vunpack.c.h.bf16 %v2220_v44  ;;  %v3620_v41 = vunpack.c.l.bf16 %v2227_v49 }
  0x9b   : > { %v2584_v45 = vmul.f32 %v3622_v36, %v608_v51  ;;  %v2588_v46 = vmul.f32 %v3624_v43, %v608_v51  ;;  %v3626_v37 = vunpack.c.h.bf16 %v2230_v50  ;;  %v3628_v44 = vunpack.c.l.bf16 %v2237_v55 }
  0x9c   : > { %v2576_v35 = vmul.f32 %v3619_v0, %v596_v58  ;;  %v2580_v47 = vmul.f32 %v3620_v41, %v608_v51  ;;  %v3630_v0 = vunpack.c.h.bf16 %v2237_v55  ;;  %v3632_v49 = vunpack.c.l.bf16 %v2240_v56 }
  0x9d   : > { %3623 = vst [vmem:[#allocation24_spill] sm:$0xff] %v2584_v45  ;;  %3625 = vst [vmem:[#allocation25_spill] sm:$0xff] %v2588_v46  ;;  %v2592_v2 = vmul.f32 %v3626_v37, %v608_v51  ;;  %v2596_v58 = vmul.f32 %v3628_v44, %v608_v51  ;;  %v3634_v45 = vunpack.c.h.bf16 %v2240_v56  ;;  %v3636_v50 = vunpack.c.l.bf16 %v2247_v61 }
  0x9e   : > { %3621 = vst [vmem:[#allocation23_spill] sm:$0xff] %v2580_v47  ;;  %v2600_v41 = vmul.f32 %v3630_v0, %v608_v51  ;;  %v2604_v36 = vmul.f32 %v3632_v49, %v608_v51  ;;  %v3638_v55 = vunpack.c.l.bf16 %v2250_v62  ;;  %v3640_v56 = vunpack.c.l.bf16 %v2257_v3 }
  0x9f   : > { %3627 = vst [vmem:[#allocation26_spill] sm:$0xff] %v2592_v2  ;;  %3629 = vst [vmem:[#allocation27_spill] sm:$0xff] %v2596_v58  ;;  %v2608_v43 = vmul.f32 %v3634_v45, %v608_v51  ;;  %v2612_v37 = vmul.f32 %v3636_v50, %v600_v38  ;;  %v3637_v2 = vunpack.c.h.bf16 %v2247_v61  ;;  %v3641_v51 = vunpack.c.h.bf16 %v2257_v3 }
  0xa0   : > { %3631 = vst [vmem:[#allocation28_spill] sm:$0xff] %v2600_v41  ;;  %3633 = vst [vmem:[#allocation29_spill] sm:$0xff] %v2604_v36  ;;  %v2620_v0 = vmul.f32 %v3638_v55, %v600_v38  ;;  %v3639_v41 = vunpack.c.h.bf16 %v2250_v62  ;;  %v2628_v45 = vmul.f32 %v3640_v56, %v600_v38  ;;  %v3642_v61 = vunpack.c.l.bf16 %v2260_v4  ;;  %v616_v36 = vpop.permute.xlu1 %615  ;;  %v612_v62 = vpop.permute.xlu0 %611 }
  0xa1   : > { %3635 = vst [vmem:[#allocation30_spill] sm:$0xff] %v2608_v43  ;;  %v2616_v44 = vmul.f32 %v3637_v2, %v600_v38  ;;  %v2632_v50 = vmul.f32 %v3641_v51, %v600_v38  ;;  %v3643_v43 = vunpack.c.h.bf16 %v2260_v4  ;;  %v3645_v56 = vunpack.c.h.bf16 %v2267_v9 }
  0xa2   : > { %v2624_v49 = vmul.f32 %v3639_v41, %v600_v38  ;;  %v2636_v2 = vmul.f32 %v3642_v61, %v600_v38  ;;  %v3644_v41 = vunpack.c.l.bf16 %v2267_v9  ;;  %v3647_v3 = vunpack.c.l.bf16 %v2270_v10 }
  0xa3   : > { %v2640_v55 = vmul.f32 %v3643_v43, %v600_v38  ;;  %v2648_v46 = vmul.f32 %v3645_v56, %v616_v36  ;;  %v3648_v61 = vunpack.c.h.bf16 %v2270_v10  ;;  %v3650_v4 = vunpack.c.l.bf16 %v2277_v15 }
  0xa4   : > { %v2644_v58 = vmul.f32 %v3644_v41, %v616_v36  ;;  %v2652_v51 = vmul.f32 %v3647_v3, %v616_v36  ;;  %v3651_v43 = vunpack.c.h.bf16 %v2277_v15  ;;  %v3653_v9 = vunpack.c.l.bf16 %v2280_v16 }
  0xa5   : > { %3646 = vst [vmem:[#allocation31_spill] sm:$0xff] %v2648_v46  ;;  %v2656_v47 = vmul.f32 %v3648_v61, %v616_v36  ;;  %v2660_v38 = vmul.f32 %v3650_v4, %v616_v36  ;;  %v3654_v46 = vunpack.c.h.bf16 %v2280_v16  ;;  %v3655_v10 = vunpack.c.l.bf16 %v2287_v21 }
  0xa6   : > { %v2664_v41 = vmul.f32 %v3651_v43, %v616_v36  ;;  %v2668_v56 = vmul.f32 %v3653_v9, %v616_v36  ;;  %v3658_v15 = vunpack.c.l.bf16 %v2290_v22  ;;  %v3662_v16 = vunpack.c.l.bf16 %v2297_v27 }
  0xa7   : > { %3649 = vst [vmem:[#allocation32_spill] sm:$0xff] %v2656_v47  ;;  %v2672_v3 = vmul.f32 %v3654_v46, %v616_v36  ;;  %v2676_v61 = vmul.f32 %v3655_v10, %v612_v62  ;;  %v3656_v47 = vunpack.c.h.bf16 %v2287_v21  ;;  %v3664_v36 = vunpack.c.h.bf16 %v2297_v27 }
  0xa8   : > { %3652 = vst [vmem:[#allocation33_spill] sm:$0xff] %v2664_v41  ;;  %v2684_v43 = vmul.f32 %v3658_v15, %v612_v62  ;;  %v3660_v41 = vunpack.c.h.bf16 %v2290_v22  ;;  %v2692_v46 = vmul.f32 %v3662_v16, %v612_v62  ;;  %v3665_v21 = vunpack.c.l.bf16 %v2300_v28  ;;  %v620_v22 = vpop.permute.xlu0 %619 }
  0xa9   : > { %v2680_v4 = vmul.f32 %v3656_v47, %v612_v62  ;;  %v2696_v10 = vmul.f32 %v3664_v36, %v612_v62  ;;  %v3669_v16 = vunpack.c.h.bf16 %v2307_v24  ;;  %v3671_v27 = vunpack.c.l.bf16 %v2310_v23 }
  0xaa   : > { %3659 = vst [vmem:[#allocation35_spill] sm:$0xff] %v2684_v43  ;;  %v2688_v9 = vmul.f32 %v3660_v41, %v612_v62  ;;  %3663 = vst [vmem:[#allocation37_spill] sm:$0xff] %v2692_v46  ;;  %v2700_v47 = vmul.f32 %v3665_v21, %v612_v62  ;;  %v624_v43 = vpop.permute.xlu1 %623  ;;  %v3668_v41 = vunpack.c.l.bf16 %v2307_v24  ;;  %v3672_v21 = vunpack.c.h.bf16 %v2310_v23 }
  0xab   : > { %3657 = vst [vmem:[#allocation34_spill] sm:$0xff] %v2680_v4  ;;  %v3667_v4 = vunpack.c.h.bf16 %v2300_v28  ;;  %v2712_v46 = vmul.f32 %v3669_v16, %v624_v43  ;;  %v2716_v36 = vmul.f32 %v3671_v27, %v624_v43  ;;  %v3674_v28 = vunpack.c.l.bf16 %v2317_v30 }
  0xac   : > { %3661 = vst [vmem:[#allocation36_spill] sm:$0xff] %v2688_v9  ;;  %3666 = vst [vmem:[#allocation38_spill] sm:$0xff] %v2700_v47  ;;  %v2708_v9 = vmul.f32 %v3668_v41, %v624_v43  ;;  %v2720_v47 = vmul.f32 %v3672_v21, %v624_v43  ;;  %v3677_v24 = vunpack.c.l.bf16 %v2320_v19  ;;  %v3679_v23 = vunpack.c.l.bf16 %v2327_v25 }
  0xad   : > { %v2704_v15 = vmul.f32 %v3667_v4, %v612_v62  ;;  %3670 = vst [vmem:[#allocation39_spill] sm:$0xff] %v2712_v46  ;;  %v2724_v62 = vmul.f32 %v3674_v28, %v624_v43  ;;  %v3675_v4 = vunpack.c.h.bf16 %v2317_v30  ;;  %v3678_v46 = vunpack.c.h.bf16 %v2320_v19 }
  0xae   : > { %3673 = vst [vmem:[#allocation40_spill] sm:$0xff] %v2720_v47  ;;  %v2732_v16 = vmul.f32 %v3677_v24, %v624_v43  ;;  %v2740_v21 = vmul.f32 %v3679_v23, %v620_v22  ;;  %v3680_v47 = vunpack.c.h.bf16 %v2327_v25  ;;  %v3682_v30 = vunpack.c.l.bf16 %v2330_v17 }
  0xaf   : > { %v2728_v41 = vmul.f32 %v3675_v4, %v624_v43  ;;  %v2736_v27 = vmul.f32 %v3678_v46, %v624_v43  ;;  %v3686_v19 = vunpack.c.l.bf16 %v2337_v31  ;;  %v3688_v46 = vunpack.c.h.bf16 %v2337_v31 }
  0xb0   : > { %v2744_v28 = vmul.f32 %v3680_v47, %v620_v22  ;;  %v2748_v4 = vmul.f32 %v3682_v30, %v620_v22  ;;  %v3689_v25 = vunpack.c.l.bf16 %v2340_v13  ;;  %v3695_v31 = vunpack.c.l.bf16 %v2350_v11 }
  0xb1   : > { %3676 = vst [vmem:[#allocation41_spill] sm:$0xff] %v2728_v41  ;;  %v3684_v41 = vunpack.c.h.bf16 %v2330_v17  ;;  %v2756_v43 = vmul.f32 %v3686_v19, %v620_v22  ;;  %v2760_v23 = vmul.f32 %v3688_v46, %v620_v22  ;;  %v628_v17 = vpop.permute.xlu0 %627  ;;  %v3693_v19 = vunpack.c.h.bf16 %v2347_v29 }
  0xb2   : > { %3681 = vst [vmem:[#allocation42_spill] sm:$0xff] %v2744_v28  ;;  %3683 = vst [vmem:[#allocation43_spill] sm:$0xff] %v2748_v4  ;;  %v2764_v47 = vmul.f32 %v3689_v25, %v620_v22  ;;  %v3691_v28 = vunpack.c.h.bf16 %v2340_v13  ;;  %v632_v4 = vpop.permute.xlu1 %631  ;;  %v3696_v25 = vunpack.c.h.bf16 %v2350_v11  ;;  %v3698_v13 = vunpack.c.l.bf16 %v2357_v26 }
  0xb3   : > { %v2752_v24 = vmul.f32 %v3684_v41, %v620_v22  ;;  %3687 = vst [vmem:[#allocation45_spill] sm:$0xff] %v2756_v43  ;;  %v3692_v41 = vunpack.c.l.bf16 %v2347_v29  ;;  %v2776_v43 = vmul.f32 %v3693_v19, %v632_v4  ;;  %v2780_v46 = vmul.f32 %v3695_v31, %v632_v4 }
  0xb4   : > { %3690 = vst [vmem:[#allocation46_spill] sm:$0xff] %v2764_v47  ;;  %v2768_v30 = vmul.f32 %v3691_v28, %v620_v22  ;;  %v2784_v47 = vmul.f32 %v3696_v25, %v632_v4  ;;  %v2788_v22 = vmul.f32 %v3698_v13, %v632_v4  ;;  %v3699_v28 = vunpack.c.h.bf16 %v2357_v26 }
  0xb5   : > { %3685 = vst [vmem:[#allocation44_spill] sm:$0xff] %v2752_v24  ;;  %v2772_v24 = vmul.f32 %v3692_v41, %v632_v4  ;;  %3694 = vst [vmem:[#allocation47_spill] sm:$0xff] %v2776_v43  ;;  %v3701_v29 = vunpack.c.l.bf16 %v2360_v7  ;;  %v3702_v43 = vunpack.c.h.bf16 %v2360_v7  ;;  %v3703_v11 = vunpack.c.l.bf16 %v2367_v32 }
  0xb6   : > { %3697 = vst [vmem:[#allocation48_spill] sm:$0xff] %v2784_v47  ;;  %v2792_v41 = vmul.f32 %v3699_v28, %v632_v4  ;;  %v3704_v47 = vunpack.c.h.bf16 %v2367_v32  ;;  %v3706_v26 = vunpack.c.l.bf16 %v2370_v5  ;;  %v3710_v7 = vunpack.c.l.bf16 %v2377_v20 }
  0xb7   : > { %v2796_v19 = vmul.f32 %v3701_v29, %v632_v4  ;;  %v2800_v31 = vmul.f32 %v3702_v43, %v632_v4  ;;  %v2804_v25 = vmul.f32 %v3703_v11, %v628_v17  ;;  %v3712_v43 = vunpack.c.h.bf16 %v2377_v20 }
  0xb8   : > { %3700 = vst [vmem:[#allocation49_spill] sm:$0xff] %v2792_v41  ;;  %v2808_v13 = vmul.f32 %v3704_v47, %v628_v17  ;;  %v2812_v28 = vmul.f32 %v3706_v26, %v628_v17  ;;  %v3708_v41 = vunpack.c.h.bf16 %v2370_v5  ;;  %v2820_v4 = vmul.f32 %v3710_v7, %v628_v17  ;;  %v636_v5 = vpop.permute.xlu0 %635 }
  0xb9   : > { %v2824_v11 = vmul.f32 %v3712_v43, %v628_v17  ;;  %v3713_v32 = vunpack.c.l.bf16 %v2380_v1  ;;  %v3717_v7 = vunpack.c.h.bf16 %v2387_v18  ;;  %v3719_v20 = vunpack.c.l.bf16 %v2390_v63 }
  0xba   : > { %3705 = vst [vmem:[#allocation50_spill] sm:$0xff] %v2808_v13  ;;  %3707 = vst [vmem:[#allocation51_spill] sm:$0xff] %v2812_v28  ;;  %v2816_v29 = vmul.f32 %v3708_v41, %v628_v17  ;;  %v3715_v13 = vunpack.c.h.bf16 %v2380_v1  ;;  %v640_v28 = vpop.permute.xlu1 %639  ;;  %v3716_v41 = vunpack.c.l.bf16 %v2387_v18  ;;  %v3722_v1 = vunpack.c.l.bf16 %v2397_v14 }
  0xbb   : > { %3711 = vst [vmem:[#allocation53_spill] sm:$0xff] %v2820_v4  ;;  %v2828_v47 = vmul.f32 %v3713_v32, %v628_v17  ;;  %v2840_v4 = vmul.f32 %v3717_v7, %v640_v28  ;;  %v2844_v43 = vmul.f32 %v3719_v20, %v640_v28  ;;  %v3720_v32 = vunpack.c.h.bf16 %v2390_v63 }
  0xbc   : > { %3709 = vst [vmem:[#allocation52_spill] sm:$0xff] %v2816_v29  ;;  %v2832_v26 = vmul.f32 %v3715_v13, %v628_v17  ;;  %v2836_v29 = vmul.f32 %v3716_v41, %v640_v28  ;;  %v2852_v17 = vmul.f32 %v3722_v1, %v640_v28  ;;  %v3723_v13 = vunpack.c.h.bf16 %v2397_v14 }
  0xbd   : > { %3714 = vst [vmem:[#allocation54_spill] sm:$0xff] %v2828_v47  ;;  %3718 = vst [vmem:[#allocation55_spill] sm:$0xff] %v2840_v4  ;;  %v2848_v47 = vmul.f32 %v3720_v32, %v640_v28  ;;  %v3725_v18 = vunpack.c.l.bf16 %v2400_v59  ;;  %v3726_v4 = vunpack.c.h.bf16 %v2400_v59  ;;  %v3728_v63 = vunpack.c.l.bf16 %v2407_v12 }
  0xbe   : > { %v2856_v41 = vmul.f32 %v3723_v13, %v640_v28  ;;  %v3732_v14 = vunpack.c.l.bf16 %v2410_v57  ;;  %v3736_v59 = vunpack.c.l.bf16 %v2417_v8 }
  0xbf   : > { %3721 = vst [vmem:[#allocation56_spill] sm:$0xff] %v2848_v47  ;;  %v2860_v7 = vmul.f32 %v3725_v18, %v640_v28  ;;  %v2864_v20 = vmul.f32 %v3726_v4, %v640_v28  ;;  %v2868_v32 = vmul.f32 %v3728_v63, %v636_v5  ;;  %v3730_v47 = vunpack.c.h.bf16 %v2407_v12 }
  0xc0   : > { %3724 = vst [vmem:[#allocation57_spill] sm:$0xff] %v2856_v41  ;;  %v2876_v13 = vmul.f32 %v3732_v14, %v636_v5  ;;  %v3734_v41 = vunpack.c.h.bf16 %v2410_v57  ;;  %v2884_v28 = vmul.f32 %v3736_v59, %v636_v5  ;;  %v3738_v4 = vunpack.c.h.bf16 %v2417_v8  ;;  %v644_v57 = vpop.permute.xlu0 %643  ;;  %v3750_v8 = vld [vmem:[#allocation4_spill] sm:$0xff] }
  0xc1   : > { %3727 = vst [vmem:[#allocation58_spill] sm:$0xff] %v2864_v20  ;;  %3729 = vst [vmem:[#allocation59_spill] sm:$0xff] %v2868_v32  ;;  %v2872_v1 = vmul.f32 %v3730_v47, %v636_v5  ;;  %v3740_v32 = vld [vmem:[#allocation2_spill] sm:$0xff] }
  0xc2   : > { %3733 = vst [vmem:[#allocation61_spill] sm:$0xff] %v2876_v13  ;;  %v2880_v18 = vmul.f32 %v3734_v41, %v636_v5  ;;  %3737 = vst [vmem:[#allocation63_spill] sm:$0xff] %v2884_v28  ;;  %v2888_v63 = vmul.f32 %v3738_v4, %v636_v5  ;;  %v3741_v12 = vunpack.c.l.bf16 %v3740_v32  ;;  %v648_v13 = vpop.permute.xlu1 %647  ;;  %v3745_v41 = vld [vmem:[#allocation3_spill] sm:$0xff]  ;;  %v3751_v4 = vunpack.c.l.bf16 %v3750_v8 }
  0xc3   : > { %3731 = vst [vmem:[#allocation60_spill] sm:$0xff] %v2872_v1  ;;  %v3743_v1 = vunpack.c.h.bf16 %v3740_v32  ;;  %v3748_v59 = vunpack.c.h.bf16 %v3745_v41 }
  0xc4   : > { %3735 = vst [vmem:[#allocation62_spill] sm:$0xff] %v2880_v18  ;;  %3739 = vst [vmem:[#allocation64_spill] sm:$0xff] %v2888_v63  ;;  %v2892_v47 = vmul.f32 %v3741_v12, %v636_v5  ;;  %v3746_v18 = vunpack.c.l.bf16 %v3745_v41  ;;  %v2908_v63 = vmul.f32 %v3751_v4, %v648_v13  ;;  %v3753_v12 = vunpack.c.h.bf16 %v3750_v8 }
  0xc5   : > { %v2896_v14 = vmul.f32 %v3743_v1, %v636_v5  ;;  %v2904_v28 = vmul.f32 %v3748_v59, %v648_v13  ;;  %v3755_v5 = vld [vmem:[#allocation5_spill] sm:$0xff] }
  0xc6   : > { %3742 = vst [vmem:[#allocation2_spill] sm:$0xff] %v2892_v47  ;;  %v2900_v20 = vmul.f32 %v3746_v18, %v648_v13  ;;  %3752 = vst [vmem:[#allocation4_spill] sm:$0xff] %v2908_v63  ;;  %v2912_v47 = vmul.f32 %v3753_v12, %v648_v13  ;;  %v3756_v32 = vunpack.c.l.bf16 %v3755_v5  ;;  %v3765_v63 = vld [vmem:[#allocation7_spill] sm:$0xff] }
  0xc7   : > { %3744 = vst [vmem:[#allocation65_spill] sm:$0xff] %v2896_v14  ;;  %3749 = vst [vmem:[#allocation66_spill] sm:$0xff] %v2904_v28  ;;  %v3758_v14 = vunpack.c.h.bf16 %v3755_v5  ;;  %v3766_v8 = vunpack.c.l.bf16 %v3765_v63 }
  0xc8   : > { %3747 = vst [vmem:[#allocation3_spill] sm:$0xff] %v2900_v20  ;;  %3754 = vst [vmem:[#allocation67_spill] sm:$0xff] %v2912_v47  ;;  %v2916_v1 = vmul.f32 %v3756_v32, %v648_v13  ;;  %v3760_v20 = vld [vmem:[#allocation6_spill] sm:$0xff]  ;;  %v3768_v47 = vunpack.c.h.bf16 %v3765_v63 }
  0xc9   : > { %v2920_v18 = vmul.f32 %v3758_v14, %v648_v13  ;;  %v3761_v41 = vunpack.c.l.bf16 %v3760_v20  ;;  %v3763_v28 = vunpack.c.h.bf16 %v3760_v20  ;;  %v2932_v12 = vmul.f32 %v3766_v8, %v644_v57 }
  0xca   : > { %3757 = vst [vmem:[#allocation5_spill] sm:$0xff] %v2916_v1  ;;  %v2936_v32 = vmul.f32 %v3768_v47, %v644_v57  ;;  %v3770_v1 = vld [vmem:[#allocation8_spill] sm:$0xff] }
  0xcb   : > { %3759 = vst [vmem:[#allocation68_spill] sm:$0xff] %v2920_v18  ;;  %v2924_v59 = vmul.f32 %v3761_v41, %v648_v13  ;;  %v2928_v4 = vmul.f32 %v3763_v28, %v648_v13  ;;  %3767 = vst [vmem:[#allocation7_spill] sm:$0xff] %v2932_v12  ;;  %v3771_v5 = vunpack.c.l.bf16 %v3770_v1  ;;  %v3773_v18 = vunpack.c.h.bf16 %v3770_v1  ;;  %v3780_v12 = vld [vmem:[#allocation10_spill] sm:$0xff]  ;;  %v652_v1 = vpop.permute.xlu0 %651 }
  0xcc   : > { %3769 = vst [vmem:[#allocation70_spill] sm:$0xff] %v2936_v32  ;;  %v3781_v63 = vunpack.c.l.bf16 %v3780_v12  ;;  %v3782_v32 = vunpack.c.h.bf16 %v3780_v12 }
  0xcd   : > { %3762 = vst [vmem:[#allocation6_spill] sm:$0xff] %v2924_v59  ;;  %3764 = vst [vmem:[#allocation69_spill] sm:$0xff] %v2928_v4  ;;  %v2940_v14 = vmul.f32 %v3771_v5, %v644_v57  ;;  %v2944_v41 = vmul.f32 %v3773_v18, %v644_v57  ;;  %v3775_v59 = vld [vmem:[#allocation9_spill] sm:$0xff]  ;;  %v3784_v18 = vld [vmem:[#allocation11_spill] sm:$0xff] }
  0xce   : > { %v3776_v20 = vunpack.c.l.bf16 %v3775_v59  ;;  %v3778_v28 = vunpack.c.h.bf16 %v3775_v59  ;;  %v2956_v47 = vmul.f32 %v3781_v63, %v644_v57  ;;  %v2960_v5 = vmul.f32 %v3782_v32, %v644_v57 }
  0xcf   : > { %3772 = vst [vmem:[#allocation8_spill] sm:$0xff] %v2940_v14  ;;  %3774 = vst [vmem:[#allocation71_spill] sm:$0xff] %v2944_v41  ;;  %v656_v14 = vpop.permute.xlu1 %655  ;;  %v3785_v41 = vunpack.c.l.bf16 %v3784_v18 }
  0xd0   : > { %v2948_v13 = vmul.f32 %v3776_v20, %v644_v57  ;;  %v2952_v8 = vmul.f32 %v3778_v28, %v644_v57  ;;  %3783 = vst [vmem:[#allocation10_spill] sm:$0xff] %v2960_v5  ;;  %v3787_v20 = vunpack.c.h.bf16 %v3784_v18  ;;  %v3788_v28 = vld [vmem:[#allocation12_spill] sm:$0xff]  ;;  %v3793_v57 = vunpack.c.l.bf16 %v2477_v54 }
  0xd1   : > { %v2964_v4 = vmul.f32 %v3785_v41, %v656_v14  ;;  %v3791_v63 = vunpack.c.h.bf16 %v3788_v28  ;;  %v3795_v5 = vunpack.c.h.bf16 %v2477_v54  ;;  %v3804_v54 = vld [vmem:[#allocation14_spill] sm:$0xff] }
  0xd2   : > { %3777 = vst [vmem:[#allocation9_spill] sm:$0xff] %v2948_v13  ;;  %3779 = vst [vmem:[#allocation72_spill] sm:$0xff] %v2952_v8  ;;  %v2968_v59 = vmul.f32 %v3787_v20, %v656_v14  ;;  %v3789_v8 = vunpack.c.l.bf16 %v3788_v28  ;;  %v2980_v32 = vmul.f32 %v3793_v57, %v656_v14  ;;  %v3801_v28 = vunpack.c.l.bf16 %v2487_v6 }
  0xd3   : > { %3786 = vst [vmem:[#allocation11_spill] sm:$0xff] %v2964_v4  ;;  %v2976_v12 = vmul.f32 %v3791_v63, %v656_v14  ;;  %v2984_v41 = vmul.f32 %v3795_v5, %v656_v14  ;;  %v3797_v4 = vld [vmem:[#allocation13_spill] sm:$0xff]  ;;  %v3802_v57 = vunpack.c.h.bf16 %v2487_v6  ;;  %v3805_v5 = vunpack.c.l.bf16 %v3804_v54 }
  0xd4   : > { %v2972_v13 = vmul.f32 %v3789_v8, %v656_v14  ;;  %3794 = vst [vmem:[#allocation74_spill] sm:$0xff] %v2980_v32  ;;  %v3798_v18 = vunpack.c.l.bf16 %v3797_v4  ;;  %v3800_v8 = vunpack.c.h.bf16 %v3797_v4  ;;  %v2996_v63 = vmul.f32 %v3801_v28, %v652_v1 }
  0xd5   : > { %3792 = vst [vmem:[#allocation73_spill] sm:$0xff] %v2976_v12  ;;  %3796 = vst [vmem:[#allocation75_spill] sm:$0xff] %v2984_v41  ;;  %v3000_v32 = vmul.f32 %v3802_v57, %v652_v1  ;;  %v3004_v41 = vmul.f32 %v3805_v5, %v652_v1  ;;  %v3807_v12 = vunpack.c.h.bf16 %v3804_v54  ;;  %v3809_v4 = vunpack.c.l.bf16 %v2497_v53 }
  0xd6   : > { %3790 = vst [vmem:[#allocation12_spill] sm:$0xff] %v2972_v13  ;;  %v2988_v20 = vmul.f32 %v3798_v18, %v656_v14  ;;  %v2992_v13 = vmul.f32 %v3800_v8, %v656_v14  ;;  %v3811_v8 = vunpack.c.h.bf16 %v2497_v53  ;;  %v3813_v6 = vunpack.c.l.bf16 %v2500_v40 }
  0xd7   : > { %3803 = vst [vmem:[#allocation76_spill] sm:$0xff] %v3000_v32  ;;  %3806 = vst [vmem:[#allocation14_spill] sm:$0xff] %v3004_v41  ;;  %v3008_v18 = vmul.f32 %v3807_v12, %v652_v1  ;;  %v3012_v14 = vmul.f32 %v3809_v4, %v652_v1  ;;  %v3815_v5 = vunpack.c.h.bf16 %v2500_v40  ;;  %v884_v40 = vpop.permute.xlu0 %883 }
  0xd8   : > { %3799 = vst [vmem:[#allocation13_spill] sm:$0xff] %v2988_v20  ;;  %v888_v20 = vpop.permute.xlu1 %887  ;;  %v3016_v28 = vmul.f32 %v3811_v8, %v652_v1  ;;  %v3020_v57 = vmul.f32 %v3813_v6, %v652_v1 }
  0xd9   : > { %3808 = vst [vmem:[#allocation77_spill] sm:$0xff] %v3008_v18  ;;  %3810 = vst [vmem:[#allocation78_spill] sm:$0xff] %v3012_v14  ;;  %v3024_v41 = vmul.f32 %v3815_v5, %v652_v1  ;;  %v954_v12 = vadd.f32 %v888_v20, %v2612_v37  ;;  %v955_v54 = vadd.f32 %v888_v20, %v2616_v44 }
  0xda   : > { %3812 = vst [vmem:[#allocation79_spill] sm:$0xff] %v3016_v28  ;;  %3814 = vst [vmem:[#allocation80_spill] sm:$0xff] %v3020_v57  ;;  %v956_v18 = vadd.f32 %v888_v20, %v2620_v0  ;;  %v957_v4 = vadd.f32 %v888_v20, %v2624_v49  ;;  %v958_v53 = vadd.f32 %v888_v20, %v2628_v45 }
  0xdb   : > { %3816 = vst [vmem:[#allocation81_spill] sm:$0xff] %v3024_v41  ;;  %v959_v8 = vadd.f32 %v888_v20, %v2632_v50  ;;  %v960_v6 = vadd.f32 %v888_v20, %v2636_v2  ;;  %v961_v57 = vadd.f32 %v888_v20, %v2640_v55  ;;  %vm1082_vm1 = vcmp.ge.f32.partialorder %v954_v12, 0.0 }
  0xdc   : > { %vm1083_vm2 = vcmp.ge.f32.partialorder %v955_v54, 0.0  ;;  %vm1084_vm3 = vcmp.ge.f32.partialorder %v956_v18, 0.0  ;;  %vm1085_vm4 = vcmp.ge.f32.partialorder %v957_v4, 0.0  ;;  %vm1086_vm5 = vcmp.ge.f32.partialorder %v958_v53, 0.0 }
  0xdd   : > { %vm1087_vm6 = vcmp.ge.f32.partialorder %v959_v8, 0.0  ;;  %vm1088_vm7 = vcmp.ge.f32.partialorder %v960_v6, 0.0  ;;  %vm1089_vm8 = vcmp.ge.f32.partialorder %v961_v57, 0.0  ;;  %v1210_v37 = vmul.f32 0.01, %v954_v12 }
  0xde   : > { %v1211_v44 = vmul.f32 0.01, %v955_v54  ;;  %v1212_v0 = vmul.f32 0.01, %v956_v18  ;;  %v946_v49 = vadd.f32 %v884_v40, %v2548_v60  ;;  %v1213_v45 = vmul.f32 0.01, %v957_v4 }
  0xdf   : > { %v1214_v50 = vmul.f32 0.01, %v958_v53  ;;  %v1215_v2 = vmul.f32 0.01, %v959_v8  ;;  %v947_v55 = vadd.f32 %v884_v40, %v2552_v42  ;;  %v1216_v1 = vmul.f32 0.01, %v960_v6 }
  0xe0   : > { %v1217_v20 = vmul.f32 0.01, %v961_v57  ;;  %v1338_v5 = vsel %vm1082_vm1, %v954_v12, %v1210_v37  ;;  %v1339_v41 = vsel %vm1083_vm2, %v955_v54, %v1211_v44  ;;  %v1340_v28 = vsel %vm1084_vm3, %v956_v18, %v1212_v0 }
  0xe1   : > { %v1341_v60 = vsel %vm1085_vm4, %v957_v4, %v1213_v45  ;;  %v1342_v14 = vsel %vm1086_vm5, %v958_v53, %v1214_v50  ;;  %v1343_v32 = vsel %vm1087_vm6, %v959_v8, %v1215_v2  ;;  %1467 = vst.msk [vmem:[%s3038_s30 + $0x40] sm:$0xff] %vm1458_vm0, %v1338_v5  ;;  %1468 = vst.msk [vmem:[%s3038_s30 + $0x48] sm:$0xff] %vm1458_vm0, %v1339_v41  ;;  %v896_v53 = vpop.permute.xlu1 %895  ;;  %vm1074_vm9 = vcmp.ge.f32.partialorder %v946_v49, 0.0  ;;  %v3818_v8 = vld [vmem:[#allocation24_spill] sm:$0xff] }
  0xe2   : > { %v1344_v42 = vsel %vm1088_vm7, %v960_v6, %v1216_v1  ;;  %v1345_v12 = vsel %vm1089_vm8, %v961_v57, %v1217_v20  ;;  %1469 = vst.msk [vmem:[%s3038_s30 + $0x50] sm:$0xff] %vm1458_vm0, %v1340_v28  ;;  %1470 = vst.msk [vmem:[%s3038_s30 + $0x58] sm:$0xff] %vm1458_vm0, %v1341_v60  ;;  %v948_v18 = vadd.f32 %v884_v40, %v2556_v48  ;;  %vm1075_vm10 = vcmp.ge.f32.partialorder %v947_v55, 0.0  ;;  %v3820_v60 = vld [vmem:[#allocation26_spill] sm:$0xff] }
  0xe3   : > { %1471 = vst.msk [vmem:[%s3038_s30 + $0x60] sm:$0xff] %vm1458_vm0, %v1342_v14  ;;  %1472 = vst.msk [vmem:[%s3038_s30 + $0x68] sm:$0xff] %vm1458_vm0, %v1343_v32  ;;  %v949_v54 = vadd.f32 %v884_v40, %v2560_v33  ;;  %v950_v41 = vadd.f32 %v884_v40, %v2564_v39  ;;  %v951_v57 = vadd.f32 %v884_v40, %v2568_v34  ;;  %v1202_v48 = vmul.f32 0.01, %v946_v49  ;;  %v3817_v32 = vld [vmem:[#allocation23_spill] sm:$0xff] }
  0xe4   : > { %1473 = vst.msk [vmem:[%s3038_s30 + $0x70] sm:$0xff] %vm1458_vm0, %v1344_v42  ;;  %1474 = vst.msk [vmem:[%s3038_s30 + $0x78] sm:$0xff] %vm1458_vm0, %v1345_v12  ;;  %v952_v28 = vadd.f32 %v884_v40, %v2572_v52  ;;  %v953_v4 = vadd.f32 %v884_v40, %v2576_v35  ;;  %vm1076_vm11 = vcmp.ge.f32.partialorder %v948_v18, 0.0  ;;  %v1203_v33 = vmul.f32 0.01, %v947_v55  ;;  %v3821_v12 = vld [vmem:[#allocation27_spill] sm:$0xff] }
  0xe5   : > { %vm1077_vm12 = vcmp.ge.f32.partialorder %v949_v54, 0.0  ;;  %vm1078_vm13 = vcmp.ge.f32.partialorder %v950_v41, 0.0  ;;  %vm1079_vm14 = vcmp.ge.f32.partialorder %v951_v57, 0.0  ;;  %v1204_v39 = vmul.f32 0.01, %v948_v18 }
  0xe6   : > { %vm1080_vm15 = vcmp.ge.f32.partialorder %v952_v28, 0.0  ;;  %vm1081_vm1 = vcmp.ge.f32.partialorder %v953_v4, 0.0  ;;  %v970_v34 = vadd.f32 %v896_v53, %v3817_v32  ;;  %v1205_v14 = vmul.f32 0.01, %v949_v54 }
  0xe7   : > { %v1206_v52 = vmul.f32 0.01, %v950_v41  ;;  %v1207_v35 = vmul.f32 0.01, %v951_v57  ;;  %v971_v6 = vadd.f32 %v896_v53, %v3818_v8  ;;  %v1208_v40 = vmul.f32 0.01, %v952_v28 }
  0xe8   : > { %v1209_v37 = vmul.f32 0.01, %v953_v4  ;;  %v1330_v44 = vsel %vm1074_vm9, %v946_v49, %v1202_v48  ;;  %v1331_v0 = vsel %vm1075_vm10, %v947_v55, %v1203_v33  ;;  %v1332_v45 = vsel %vm1076_vm11, %v948_v18, %v1204_v39  ;;  %v3819_v55 = vld [vmem:[#allocation25_spill] sm:$0xff]  ;;  %v892_v33 = vpop.permute.xlu0 %891 }
  0xe9   : > { %v1333_v50 = vsel %vm1077_vm12, %v949_v54, %v1205_v14  ;;  %v1334_v2 = vsel %vm1078_vm13, %v950_v41, %v1206_v52  ;;  %v1335_v1 = vsel %vm1079_vm14, %v951_v57, %v1207_v35  ;;  %1459 = vst.msk [vmem:[%s3038_s30] sm:$0xff] %vm1458_vm0, %v1330_v44  ;;  %1460 = vst.msk [vmem:[%s3038_s30 + $0x8] sm:$0xff] %vm1458_vm0, %v1331_v0  ;;  %v3822_v54 = vld [vmem:[#allocation28_spill] sm:$0xff]  ;;  %v3823_v57 = vld [vmem:[#allocation29_spill] sm:$0xff]  ;;  %vm1098_vm2 = vcmp.ge.f32.partialorder %v970_v34, 0.0 }
  0xea   : > { %v1336_v20 = vsel %vm1080_vm15, %v952_v28, %v1208_v40  ;;  %v1337_v49 = vsel %vm1081_vm1, %v953_v4, %v1209_v37  ;;  %1461 = vst.msk [vmem:[%s3038_s30 + $0x10] sm:$0xff] %vm1458_vm0, %v1332_v45  ;;  %1462 = vst.msk [vmem:[%s3038_s30 + $0x18] sm:$0xff] %vm1458_vm0, %v1333_v50  ;;  %v972_v5 = vadd.f32 %v896_v53, %v3819_v55  ;;  %v3824_v4 = vld [vmem:[#allocation30_spill] sm:$0xff]  ;;  %vm1099_vm3 = vcmp.ge.f32.partialorder %v971_v6, 0.0  ;;  %v3825_v52 = vld [vmem:[#allocation15_spill] sm:$0xff] }
  0xeb   : > { %1463 = vst.msk [vmem:[%s3038_s30 + $0x20] sm:$0xff] %vm1458_vm0, %v1334_v2  ;;  %1464 = vst.msk [vmem:[%s3038_s30 + $0x28] sm:$0xff] %vm1458_vm0, %v1335_v1  ;;  %v973_v42 = vadd.f32 %v896_v53, %v3820_v60  ;;  %v974_v18 = vadd.f32 %v896_v53, %v3821_v12  ;;  %v975_v41 = vadd.f32 %v896_v53, %v3822_v54  ;;  %v1226_v39 = vmul.f32 0.01, %v970_v34  ;;  %v3826_v37 = vld [vmem:[#allocation16_spill] sm:$0xff] }
  0xec   : > { %1465 = vst.msk [vmem:[%s3038_s30 + $0x30] sm:$0xff] %vm1458_vm0, %v1336_v20  ;;  %1466 = vst.msk [vmem:[%s3038_s30 + $0x38] sm:$0xff] %vm1458_vm0, %v1337_v49  ;;  %v976_v28 = vadd.f32 %v896_v53, %v3823_v57  ;;  %v977_v48 = vadd.f32 %v896_v53, %v3824_v4  ;;  %vm1100_vm4 = vcmp.ge.f32.partialorder %v972_v5, 0.0  ;;  %v1227_v32 = vmul.f32 0.01, %v971_v6 }
  0xed   : > { %vm1101_vm5 = vcmp.ge.f32.partialorder %v973_v42, 0.0  ;;  %vm1102_vm6 = vcmp.ge.f32.partialorder %v974_v18, 0.0  ;;  %vm1103_vm7 = vcmp.ge.f32.partialorder %v975_v41, 0.0  ;;  %v1228_v14 = vmul.f32 0.01, %v972_v5 }
  0xee   : > { %vm1104_vm8 = vcmp.ge.f32.partialorder %v976_v28, 0.0  ;;  %vm1105_vm9 = vcmp.ge.f32.partialorder %v977_v48, 0.0  ;;  %v962_v35 = vadd.f32 %v892_v33, %v3825_v52  ;;  %v1229_v8 = vmul.f32 0.01, %v973_v42 }
  0xef   : > { %v1230_v40 = vmul.f32 0.01, %v974_v18  ;;  %v1231_v53 = vmul.f32 0.01, %v975_v41  ;;  %v963_v44 = vadd.f32 %v892_v33, %v3826_v37  ;;  %v1232_v0 = vmul.f32 0.01, %v976_v28 }
  0xf0   : > { %v1233_v45 = vmul.f32 0.01, %v977_v48  ;;  %v1354_v50 = vsel %vm1098_vm2, %v970_v34, %v1226_v39  ;;  %v1355_v2 = vsel %vm1099_vm3, %v971_v6, %v1227_v32  ;;  %v1356_v1 = vsel %vm1100_vm4, %v972_v5, %v1228_v14  ;;  %v3827_v6 = vld [vmem:[#allocation17_spill] sm:$0xff]  ;;  %v904_v32 = vpop.permute.xlu1 %903 }
  0xf1   : > { %v1357_v20 = vsel %vm1101_vm5, %v973_v42, %v1229_v8  ;;  %v1358_v49 = vsel %vm1102_vm6, %v974_v18, %v1230_v40  ;;  %v1359_v55 = vsel %vm1103_vm7, %v975_v41, %v1231_v53  ;;  %1483 = vst.msk [vmem:[%s3038_s30 + $0xc0] sm:$0xff] %vm1458_vm0, %v1354_v50  ;;  %1484 = vst.msk [vmem:[%s3038_s30 + $0xc8] sm:$0xff] %vm1458_vm0, %v1355_v2  ;;  %v3828_v42 = vld [vmem:[#allocation18_spill] sm:$0xff]  ;;  %v3829_v18 = vld [vmem:[#allocation19_spill] sm:$0xff]  ;;  %vm1090_vm10 = vcmp.ge.f32.partialorder %v962_v35, 0.0 }
  0xf2   : > { %v1360_v60 = vsel %vm1104_vm8, %v976_v28, %v1232_v0  ;;  %v1361_v34 = vsel %vm1105_vm9, %v977_v48, %v1233_v45  ;;  %1485 = vst.msk [vmem:[%s3038_s30 + $0xd0] sm:$0xff] %vm1458_vm0, %v1356_v1  ;;  %1486 = vst.msk [vmem:[%s3038_s30 + $0xd8] sm:$0xff] %vm1458_vm0, %v1357_v20  ;;  %v964_v5 = vadd.f32 %v892_v33, %v3827_v6  ;;  %v3830_v41 = vld [vmem:[#allocation20_spill] sm:$0xff]  ;;  %v3831_v28 = vld [vmem:[#allocation21_spill] sm:$0xff]  ;;  %vm1091_vm11 = vcmp.ge.f32.partialorder %v963_v44, 0.0 }
  0xf3   : > { %1487 = vst.msk [vmem:[%s3038_s30 + $0xe0] sm:$0xff] %vm1458_vm0, %v1358_v49  ;;  %1488 = vst.msk [vmem:[%s3038_s30 + $0xe8] sm:$0xff] %vm1458_vm0, %v1359_v55  ;;  %v965_v12 = vadd.f32 %v892_v33, %v3828_v42  ;;  %v966_v54 = vadd.f32 %v892_v33, %v3829_v18  ;;  %v967_v57 = vadd.f32 %v892_v33, %v3830_v41  ;;  %v3832_v48 = vld [vmem:[#allocation22_spill] sm:$0xff]  ;;  %v1218_v14 = vmul.f32 0.01, %v962_v35  ;;  %v3833_v0 = vld [vmem:[#allocation31_spill] sm:$0xff] }
  0xf4   : > { %1489 = vst.msk [vmem:[%s3038_s30 + $0xf0] sm:$0xff] %vm1458_vm0, %v1360_v60  ;;  %1490 = vst.msk [vmem:[%s3038_s30 + $0xf8] sm:$0xff] %vm1458_vm0, %v1361_v34  ;;  %v968_v4 = vadd.f32 %v892_v33, %v3831_v28  ;;  %v969_v39 = vadd.f32 %v892_v33, %v3832_v48  ;;  %vm1092_vm12 = vcmp.ge.f32.partialorder %v964_v5, 0.0  ;;  %v1219_v52 = vmul.f32 0.01, %v963_v44  ;;  %v3834_v6 = vld [vmem:[#allocation32_spill] sm:$0xff] }
  0xf5   : > { %vm1093_vm13 = vcmp.ge.f32.partialorder %v965_v12, 0.0  ;;  %vm1094_vm14 = vcmp.ge.f32.partialorder %v966_v54, 0.0  ;;  %vm1095_vm15 = vcmp.ge.f32.partialorder %v967_v57, 0.0  ;;  %v1220_v8 = vmul.f32 0.01, %v964_v5 }
  0xf6   : > { %vm1096_vm1 = vcmp.ge.f32.partialorder %v968_v4, 0.0  ;;  %vm1097_vm2 = vcmp.ge.f32.partialorder %v969_v39, 0.0  ;;  %v986_v40 = vadd.f32 %v904_v32, %v2644_v58  ;;  %v1221_v53 = vmul.f32 0.01, %v965_v12 }
  0xf7   : > { %v1222_v37 = vmul.f32 0.01, %v966_v54  ;;  %v1223_v33 = vmul.f32 0.01, %v967_v57  ;;  %v987_v45 = vadd.f32 %v904_v32, %v3833_v0  ;;  %v1224_v50 = vmul.f32 0.01, %v968_v4 }
  0xf8   : > { %v1225_v2 = vmul.f32 0.01, %v969_v39  ;;  %v1346_v1 = vsel %vm1090_vm10, %v962_v35, %v1218_v14  ;;  %v1347_v20 = vsel %vm1091_vm11, %v963_v44, %v1219_v52  ;;  %v1348_v49 = vsel %vm1092_vm12, %v964_v5, %v1220_v8 }
  0xf9   : > { %v1349_v58 = vsel %vm1093_vm13, %v965_v12, %v1221_v53  ;;  %v1350_v55 = vsel %vm1094_vm14, %v966_v54, %v1222_v37  ;;  %v1351_v60 = vsel %vm1095_vm15, %v967_v57, %v1223_v33  ;;  %1475 = vst.msk [vmem:[%s3038_s30 + $0x80] sm:$0xff] %vm1458_vm0, %v1346_v1  ;;  %1476 = vst.msk [vmem:[%s3038_s30 + $0x88] sm:$0xff] %vm1458_vm0, %v1347_v20  ;;  %v3835_v12 = vld [vmem:[#allocation33_spill] sm:$0xff]  ;;  %v900_v57 = vpop.permute.xlu0 %899  ;;  %vm1114_vm3 = vcmp.ge.f32.partialorder %v986_v40, 0.0  ;;  %v3838_v1 = vld [vmem:[#allocation36_spill] sm:$0xff] }
  0xfa   : > { %v1352_v34 = vsel %vm1096_vm1, %v968_v4, %v1224_v50  ;;  %v1353_v35 = vsel %vm1097_vm2, %v969_v39, %v1225_v2  ;;  %1477 = vst.msk [vmem:[%s3038_s30 + $0x90] sm:$0xff] %vm1458_vm0, %v1348_v49  ;;  %1478 = vst.msk [vmem:[%s3038_s30 + $0x98] sm:$0xff] %vm1458_vm0, %v1349_v58  ;;  %v988_v44 = vadd.f32 %v904_v32, %v2652_v51  ;;  %vm1115_vm4 = vcmp.ge.f32.partialorder %v987_v45, 0.0  ;;  %v3836_v39 = vld [vmem:[#allocation34_spill] sm:$0xff]  ;;  %v3839_v49 = vld [vmem:[#allocation37_spill] sm:$0xff] }
  0xfb   : > { %1479 = vst.msk [vmem:[%s3038_s30 + $0xa0] sm:$0xff] %vm1458_vm0, %v1350_v55  ;;  %1480 = vst.msk [vmem:[%s3038_s30 + $0xa8] sm:$0xff] %vm1458_vm0, %v1351_v60  ;;  %v989_v5 = vadd.f32 %v904_v32, %v3834_v6  ;;  %v990_v42 = vadd.f32 %v904_v32, %v2660_v38  ;;  %v991_v18 = vadd.f32 %v904_v32, %v3835_v12  ;;  %v1242_v51 = vmul.f32 0.01, %v986_v40  ;;  %v3840_v60 = vld [vmem:[#allocation38_spill] sm:$0xff] }
  0xfc   : > { %1481 = vst.msk [vmem:[%s3038_s30 + $0xb0] sm:$0xff] %vm1458_vm0, %v1352_v34  ;;  %1482 = vst.msk [vmem:[%s3038_s30 + $0xb8] sm:$0xff] %vm1458_vm0, %v1353_v35  ;;  %v992_v54 = vadd.f32 %v904_v32, %v2668_v56  ;;  %v993_v41 = vadd.f32 %v904_v32, %v2672_v3  ;;  %vm1116_vm5 = vcmp.ge.f32.partialorder %v988_v44, 0.0  ;;  %v1243_v28 = vmul.f32 0.01, %v987_v45 }
  0xfd   : > { %vm1117_vm6 = vcmp.ge.f32.partialorder %v989_v5, 0.0  ;;  %vm1118_vm7 = vcmp.ge.f32.partialorder %v990_v42, 0.0  ;;  %vm1119_vm8 = vcmp.ge.f32.partialorder %v991_v18, 0.0  ;;  %v1244_v38 = vmul.f32 0.01, %v988_v44 }
  0xfe   : > { %vm1120_vm9 = vcmp.ge.f32.partialorder %v992_v54, 0.0  ;;  %vm1121_vm10 = vcmp.ge.f32.partialorder %v993_v41, 0.0  ;;  %v978_v4 = vadd.f32 %v900_v57, %v2676_v61  ;;  %v1245_v48 = vmul.f32 0.01, %v989_v5 }
  0xff   : > { %v1246_v56 = vmul.f32 0.01, %v990_v42  ;;  %v1247_v3 = vmul.f32 0.01, %v991_v18  ;;  %v979_v32 = vadd.f32 %v900_v57, %v3836_v39  ;;  %v1248_v14 = vmul.f32 0.01, %v992_v54 }
 0x100   : > { %v1249_v52 = vmul.f32 0.01, %v993_v41  ;;  %v1370_v8 = vsel %vm1114_vm3, %v986_v40, %v1242_v51  ;;  %v1371_v53 = vsel %vm1115_vm4, %v987_v45, %v1243_v28  ;;  %v1372_v37 = vsel %vm1116_vm5, %v988_v44, %v1244_v38  ;;  %v3837_v45 = vld [vmem:[#allocation35_spill] sm:$0xff]  ;;  %v912_v44 = vpop.permute.xlu1 %911 }
 0x101   : > { %v1373_v61 = vsel %vm1117_vm6, %v989_v5, %v1245_v48  ;;  %v1374_v33 = vsel %vm1118_vm7, %v990_v42, %v1246_v56  ;;  %v1375_v0 = vsel %vm1119_vm8, %v991_v18, %v1247_v3  ;;  %1499 = vst.msk [vmem:[%s3038_s30 + $0x140] sm:$0xff] %vm1458_vm0, %v1370_v8  ;;  %1500 = vst.msk [vmem:[%s3038_s30 + $0x148] sm:$0xff] %vm1458_vm0, %v1371_v53  ;;  %vm1106_vm11 = vcmp.ge.f32.partialorder %v978_v4, 0.0  ;;  %v3843_v53 = vld [vmem:[#allocation41_spill] sm:$0xff] }
 0x102   : > { %v1376_v50 = vsel %vm1120_vm9, %v992_v54, %v1248_v14  ;;  %v1377_v40 = vsel %vm1121_vm10, %v993_v41, %v1249_v52  ;;  %1501 = vst.msk [vmem:[%s3038_s30 + $0x150] sm:$0xff] %vm1458_vm0, %v1372_v37  ;;  %1502 = vst.msk [vmem:[%s3038_s30 + $0x158] sm:$0xff] %vm1458_vm0, %v1373_v61  ;;  %v980_v2 = vadd.f32 %v900_v57, %v3837_v45  ;;  %vm1107_vm12 = vcmp.ge.f32.partialorder %v979_v32, 0.0  ;;  %v3841_v54 = vld [vmem:[#allocation39_spill] sm:$0xff]  ;;  %v3842_v14 = vld [vmem:[#allocation40_spill] sm:$0xff] }
 0x103   : > { %1503 = vst.msk [vmem:[%s3038_s30 + $0x160] sm:$0xff] %vm1458_vm0, %v1374_v33  ;;  %1504 = vst.msk [vmem:[%s3038_s30 + $0x168] sm:$0xff] %vm1458_vm0, %v1375_v0  ;;  %v981_v20 = vadd.f32 %v900_v57, %v3838_v1  ;;  %v982_v58 = vadd.f32 %v900_v57, %v3839_v49  ;;  %v983_v55 = vadd.f32 %v900_v57, %v2696_v10  ;;  %v1234_v6 = vmul.f32 0.01, %v978_v4  ;;  %v908_v0 = vpop.permute.xlu0 %907 }
 0x104   : > { %1505 = vst.msk [vmem:[%s3038_s30 + $0x170] sm:$0xff] %vm1458_vm0, %v1376_v50  ;;  %1506 = vst.msk [vmem:[%s3038_s30 + $0x178] sm:$0xff] %vm1458_vm0, %v1377_v40  ;;  %v984_v34 = vadd.f32 %v900_v57, %v3840_v60  ;;  %v985_v35 = vadd.f32 %v900_v57, %v2704_v15  ;;  %vm1108_vm13 = vcmp.ge.f32.partialorder %v980_v2, 0.0  ;;  %v1235_v5 = vmul.f32 0.01, %v979_v32 }
 0x105   : > { %vm1109_vm14 = vcmp.ge.f32.partialorder %v981_v20, 0.0  ;;  %vm1110_vm15 = vcmp.ge.f32.partialorder %v982_v58, 0.0  ;;  %vm1111_vm1 = vcmp.ge.f32.partialorder %v983_v55, 0.0  ;;  %v1236_v42 = vmul.f32 0.01, %v980_v2 }
 0x106   : > { %vm1112_vm2 = vcmp.ge.f32.partialorder %v984_v34, 0.0  ;;  %vm1113_vm3 = vcmp.ge.f32.partialorder %v985_v35, 0.0  ;;  %v1002_v10 = vadd.f32 %v912_v44, %v2708_v9  ;;  %v1237_v12 = vmul.f32 0.01, %v981_v20 }
 0x107   : > { %v1238_v18 = vmul.f32 0.01, %v982_v58  ;;  %v1239_v15 = vmul.f32 0.01, %v983_v55  ;;  %v1003_v41 = vadd.f32 %v912_v44, %v3841_v54  ;;  %v1240_v57 = vmul.f32 0.01, %v984_v34 }
 0x108   : > { %v1241_v51 = vmul.f32 0.01, %v985_v35  ;;  %v1362_v28 = vsel %vm1106_vm11, %v978_v4, %v1234_v6  ;;  %v1363_v38 = vsel %vm1107_vm12, %v979_v32, %v1235_v5  ;;  %v1364_v48 = vsel %vm1108_vm13, %v980_v2, %v1236_v42  ;;  %v3844_v2 = vld [vmem:[#allocation42_spill] sm:$0xff]  ;;  %v3845_v5 = vld [vmem:[#allocation43_spill] sm:$0xff] }
 0x109   : > { %v1365_v9 = vsel %vm1109_vm14, %v981_v20, %v1237_v12  ;;  %v1366_v56 = vsel %vm1110_vm15, %v982_v58, %v1238_v18  ;;  %v1367_v3 = vsel %vm1111_vm1, %v983_v55, %v1239_v15  ;;  %1491 = vst.msk [vmem:[%s3038_s30 + $0x100] sm:$0xff] %vm1458_vm0, %v1362_v28  ;;  %1492 = vst.msk [vmem:[%s3038_s30 + $0x108] sm:$0xff] %vm1458_vm0, %v1363_v38  ;;  %vm1130_vm4 = vcmp.ge.f32.partialorder %v1002_v10, 0.0  ;;  %v3847_v18 = vld [vmem:[#allocation45_spill] sm:$0xff]  ;;  %v920_v28 = vpop.permute.xlu1 %919 }
 0x10a   : > { %v1368_v39 = vsel %vm1112_vm2, %v984_v34, %v1240_v57  ;;  %v1369_v4 = vsel %vm1113_vm3, %v985_v35, %v1241_v51  ;;  %1493 = vst.msk [vmem:[%s3038_s30 + $0x110] sm:$0xff] %vm1458_vm0, %v1364_v48  ;;  %1494 = vst.msk [vmem:[%s3038_s30 + $0x118] sm:$0xff] %vm1458_vm0, %v1365_v9  ;;  %v1004_v32 = vadd.f32 %v912_v44, %v2716_v36  ;;  %vm1131_vm5 = vcmp.ge.f32.partialorder %v1003_v41, 0.0 }
 0x10b   : > { %1495 = vst.msk [vmem:[%s3038_s30 + $0x120] sm:$0xff] %vm1458_vm0, %v1366_v56  ;;  %1496 = vst.msk [vmem:[%s3038_s30 + $0x128] sm:$0xff] %vm1458_vm0, %v1367_v3  ;;  %v1005_v52 = vadd.f32 %v912_v44, %v3842_v14  ;;  %v1006_v8 = vadd.f32 %v912_v44, %v2724_v62  ;;  %v1007_v37 = vadd.f32 %v912_v44, %v3843_v53  ;;  %v1258_v36 = vmul.f32 0.01, %v1002_v10 }
 0x10c   : > { %1497 = vst.msk [vmem:[%s3038_s30 + $0x130] sm:$0xff] %vm1458_vm0, %v1368_v39  ;;  %1498 = vst.msk [vmem:[%s3038_s30 + $0x138] sm:$0xff] %vm1458_vm0, %v1369_v4  ;;  %v1008_v61 = vadd.f32 %v912_v44, %v2732_v16  ;;  %v1009_v33 = vadd.f32 %v912_v44, %v2736_v27  ;;  %vm1132_vm6 = vcmp.ge.f32.partialorder %v1004_v32, 0.0  ;;  %v1259_v50 = vmul.f32 0.01, %v1003_v41  ;;  %v3849_v39 = vld [vmem:[#allocation47_spill] sm:$0xff] }
 0x10d   : > { %vm1133_vm7 = vcmp.ge.f32.partialorder %v1005_v52, 0.0  ;;  %vm1134_vm8 = vcmp.ge.f32.partialorder %v1006_v8, 0.0  ;;  %vm1135_vm9 = vcmp.ge.f32.partialorder %v1007_v37, 0.0  ;;  %v1260_v62 = vmul.f32 0.01, %v1004_v32 }
 0x10e   : > { %vm1136_vm10 = vcmp.ge.f32.partialorder %v1008_v61, 0.0  ;;  %vm1137_vm11 = vcmp.ge.f32.partialorder %v1009_v33, 0.0  ;;  %v994_v40 = vadd.f32 %v908_v0, %v2740_v21  ;;  %v1261_v45 = vmul.f32 0.01, %v1005_v52 }
 0x10f   : > { %v1262_v16 = vmul.f32 0.01, %v1006_v8  ;;  %v1263_v27 = vmul.f32 0.01, %v1007_v37  ;;  %v995_v1 = vadd.f32 %v908_v0, %v3844_v2  ;;  %v1264_v20 = vmul.f32 0.01, %v1008_v61 }
 0x110   : > { %v1265_v49 = vmul.f32 0.01, %v1009_v33  ;;  %v1386_v58 = vsel %vm1130_vm4, %v1002_v10, %v1258_v36  ;;  %v1387_v55 = vsel %vm1131_vm5, %v1003_v41, %v1259_v50  ;;  %v1388_v60 = vsel %vm1132_vm6, %v1004_v32, %v1260_v62  ;;  %v3846_v10 = vld [vmem:[#allocation44_spill] sm:$0xff]  ;;  %v3848_v41 = vld [vmem:[#allocation46_spill] sm:$0xff] }
 0x111   : > { %v1389_v21 = vsel %vm1133_vm7, %v1005_v52, %v1261_v45  ;;  %v1390_v34 = vsel %vm1134_vm8, %v1006_v8, %v1262_v16  ;;  %v1391_v35 = vsel %vm1135_vm9, %v1007_v37, %v1263_v27  ;;  %1515 = vst.msk [vmem:[%s3038_s30 + $0x1c0] sm:$0xff] %vm1458_vm0, %v1386_v58  ;;  %1516 = vst.msk [vmem:[%s3038_s30 + $0x1c8] sm:$0xff] %vm1458_vm0, %v1387_v55  ;;  %vm1122_vm12 = vcmp.ge.f32.partialorder %v994_v40, 0.0  ;;  %v3850_v50 = vld [vmem:[#allocation48_spill] sm:$0xff]  ;;  %v3851_v45 = vld [vmem:[#allocation49_spill] sm:$0xff] }
 0x112   : > { %v1392_v44 = vsel %vm1136_vm10, %v1008_v61, %v1264_v20  ;;  %v1393_v6 = vsel %vm1137_vm11, %v1009_v33, %v1265_v49  ;;  %1517 = vst.msk [vmem:[%s3038_s30 + $0x1d0] sm:$0xff] %vm1458_vm0, %v1388_v60  ;;  %1518 = vst.msk [vmem:[%s3038_s30 + $0x1d8] sm:$0xff] %vm1458_vm0, %v1389_v21  ;;  %v996_v42 = vadd.f32 %v908_v0, %v3845_v5  ;;  %vm1123_vm13 = vcmp.ge.f32.partialorder %v995_v1, 0.0  ;;  %v3852_v55 = vld [vmem:[#allocation50_spill] sm:$0xff] }
 0x113   : > { %1519 = vst.msk [vmem:[%s3038_s30 + $0x1e0] sm:$0xff] %vm1458_vm0, %v1390_v34  ;;  %1520 = vst.msk [vmem:[%s3038_s30 + $0x1e8] sm:$0xff] %vm1458_vm0, %v1391_v35  ;;  %v997_v12 = vadd.f32 %v908_v0, %v3846_v10  ;;  %v998_v15 = vadd.f32 %v908_v0, %v3847_v18  ;;  %v999_v54 = vadd.f32 %v908_v0, %v2760_v23  ;;  %v1250_v38 = vmul.f32 0.01, %v994_v40  ;;  %v3853_v18 = vld [vmem:[#allocation51_spill] sm:$0xff] }
 0x114   : > { %1521 = vst.msk [vmem:[%s3038_s30 + $0x1f0] sm:$0xff] %vm1458_vm0, %v1392_v44  ;;  %1522 = vst.msk [vmem:[%s3038_s30 + $0x1f8] sm:$0xff] %vm1458_vm0, %v1393_v6  ;;  %v1000_v57 = vadd.f32 %v908_v0, %v3848_v41  ;;  %v1001_v51 = vadd.f32 %v908_v0, %v2768_v30  ;;  %vm1124_vm14 = vcmp.ge.f32.partialorder %v996_v42, 0.0  ;;  %v1251_v48 = vmul.f32 0.01, %v995_v1 }
 0x115   : > { %vm1125_vm15 = vcmp.ge.f32.partialorder %v997_v12, 0.0  ;;  %vm1126_vm1 = vcmp.ge.f32.partialorder %v998_v15, 0.0  ;;  %vm1127_vm2 = vcmp.ge.f32.partialorder %v999_v54, 0.0  ;;  %v1252_v9 = vmul.f32 0.01, %v996_v42 }
 0x116   : > { %vm1128_vm3 = vcmp.ge.f32.partialorder %v1000_v57, 0.0  ;;  %vm1129_vm4 = vcmp.ge.f32.partialorder %v1001_v51, 0.0  ;;  %v1018_v23 = vadd.f32 %v920_v28, %v2772_v24  ;;  %v1253_v56 = vmul.f32 0.01, %v997_v12 }
 0x117   : > { %v1254_v3 = vmul.f32 0.01, %v998_v15  ;;  %v1255_v30 = vmul.f32 0.01, %v999_v54  ;;  %v1019_v4 = vadd.f32 %v920_v28, %v3849_v39  ;;  %v1256_v32 = vmul.f32 0.01, %v1000_v57 }
 0x118   : > { %v1257_v14 = vmul.f32 0.01, %v1001_v51  ;;  %v1378_v52 = vsel %vm1122_vm12, %v994_v40, %v1250_v38  ;;  %v1379_v8 = vsel %vm1123_vm13, %v995_v1, %v1251_v48  ;;  %v1380_v53 = vsel %vm1124_vm14, %v996_v42, %v1252_v9  ;;  %v916_v1 = vpop.permute.xlu0 %915  ;;  %v3856_v38 = vld [vmem:[#allocation54_spill] sm:$0xff] }
 0x119   : > { %v1381_v24 = vsel %vm1125_vm15, %v997_v12, %v1253_v56  ;;  %v1382_v37 = vsel %vm1126_vm1, %v998_v15, %v1254_v3  ;;  %v1383_v61 = vsel %vm1127_vm2, %v999_v54, %v1255_v30  ;;  %1507 = vst.msk [vmem:[%s3038_s30 + $0x180] sm:$0xff] %vm1458_vm0, %v1378_v52  ;;  %1508 = vst.msk [vmem:[%s3038_s30 + $0x188] sm:$0xff] %vm1458_vm0, %v1379_v8  ;;  %vm1146_vm5 = vcmp.ge.f32.partialorder %v1018_v23, 0.0  ;;  %v3854_v54 = vld [vmem:[#allocation52_spill] sm:$0xff] }
 0x11a   : > { %v1384_v33 = vsel %vm1128_vm3, %v1000_v57, %v1256_v32  ;;  %v1385_v0 = vsel %vm1129_vm4, %v1001_v51, %v1257_v14  ;;  %1509 = vst.msk [vmem:[%s3038_s30 + $0x190] sm:$0xff] %vm1458_vm0, %v1380_v53  ;;  %1510 = vst.msk [vmem:[%s3038_s30 + $0x198] sm:$0xff] %vm1458_vm0, %v1381_v24  ;;  %v1020_v36 = vadd.f32 %v920_v28, %v2780_v46  ;;  %vm1147_vm6 = vcmp.ge.f32.partialorder %v1019_v4, 0.0  ;;  %v3855_v57 = vld [vmem:[#allocation53_spill] sm:$0xff]  ;;  %v3857_v32 = vld [vmem:[#allocation55_spill] sm:$0xff] }
 0x11b   : > { %1511 = vst.msk [vmem:[%s3038_s30 + $0x1a0] sm:$0xff] %vm1458_vm0, %v1382_v37  ;;  %1512 = vst.msk [vmem:[%s3038_s30 + $0x1a8] sm:$0xff] %vm1458_vm0, %v1383_v61  ;;  %v1021_v62 = vadd.f32 %v920_v28, %v3850_v50  ;;  %v1022_v40 = vadd.f32 %v920_v28, %v2788_v22  ;;  %v1023_v16 = vadd.f32 %v920_v28, %v3851_v45  ;;  %v1274_v46 = vmul.f32 0.01, %v1018_v23 }
 0x11c   : > { %1513 = vst.msk [vmem:[%s3038_s30 + $0x1b0] sm:$0xff] %vm1458_vm0, %v1384_v33  ;;  %1514 = vst.msk [vmem:[%s3038_s30 + $0x1b8] sm:$0xff] %vm1458_vm0, %v1385_v0  ;;  %v1024_v27 = vadd.f32 %v920_v28, %v2796_v19  ;;  %v1025_v2 = vadd.f32 %v920_v28, %v2800_v31  ;;  %vm1148_vm7 = vcmp.ge.f32.partialorder %v1020_v36, 0.0  ;;  %v1275_v20 = vmul.f32 0.01, %v1019_v4 }
 0x11d   : > { %vm1149_vm8 = vcmp.ge.f32.partialorder %v1021_v62, 0.0  ;;  %vm1150_vm9 = vcmp.ge.f32.partialorder %v1022_v40, 0.0  ;;  %vm1151_vm10 = vcmp.ge.f32.partialorder %v1023_v16, 0.0  ;;  %v1276_v22 = vmul.f32 0.01, %v1020_v36 }
 0x11e   : > { %vm1152_vm11 = vcmp.ge.f32.partialorder %v1024_v27, 0.0  ;;  %vm1153_vm12 = vcmp.ge.f32.partialorder %v1025_v2, 0.0  ;;  %v1010_v49 = vadd.f32 %v916_v1, %v2804_v25  ;;  %v1277_v58 = vmul.f32 0.01, %v1021_v62 }
 0x11f   : > { %v1278_v19 = vmul.f32 0.01, %v1022_v40  ;;  %v1279_v31 = vmul.f32 0.01, %v1023_v16  ;;  %v1011_v60 = vadd.f32 %v916_v1, %v3852_v55  ;;  %v1280_v21 = vmul.f32 0.01, %v1024_v27 }
 0x120   : > { %v1281_v34 = vmul.f32 0.01, %v1025_v2  ;;  %v1402_v35 = vsel %vm1146_vm5, %v1018_v23, %v1274_v46  ;;  %v1403_v44 = vsel %vm1147_vm6, %v1019_v4, %v1275_v20  ;;  %v1404_v6 = vsel %vm1148_vm7, %v1020_v36, %v1276_v22  ;;  %v928_v23 = vpop.permute.xlu1 %927  ;;  %v924_v20 = vpop.permute.xlu0 %923  ;;  %v3862_v55 = vld [vmem:[#allocation60_spill] sm:$0xff] }
 0x121   : > { %v1405_v25 = vsel %vm1149_vm8, %v1021_v62, %v1277_v58  ;;  %v1406_v5 = vsel %vm1150_vm9, %v1022_v40, %v1278_v19  ;;  %v1407_v42 = vsel %vm1151_vm10, %v1023_v16, %v1279_v31  ;;  %1531 = vst.msk [vmem:[%s3038_s30 + $0x240] sm:$0xff] %vm1458_vm0, %v1402_v35  ;;  %1532 = vst.msk [vmem:[%s3038_s30 + $0x248] sm:$0xff] %vm1458_vm0, %v1403_v44  ;;  %vm1138_vm13 = vcmp.ge.f32.partialorder %v1010_v49, 0.0  ;;  %v3858_v62 = vld [vmem:[#allocation56_spill] sm:$0xff]  ;;  %v3859_v16 = vld [vmem:[#allocation57_spill] sm:$0xff] }
 0x122   : > { %v1408_v10 = vsel %vm1152_vm11, %v1024_v27, %v1280_v21  ;;  %v1409_v12 = vsel %vm1153_vm12, %v1025_v2, %v1281_v34  ;;  %1533 = vst.msk [vmem:[%s3038_s30 + $0x250] sm:$0xff] %vm1458_vm0, %v1404_v6  ;;  %1534 = vst.msk [vmem:[%s3038_s30 + $0x258] sm:$0xff] %vm1458_vm0, %v1405_v25  ;;  %v1012_v15 = vadd.f32 %v916_v1, %v3853_v18  ;;  %vm1139_vm14 = vcmp.ge.f32.partialorder %v1011_v60, 0.0  ;;  %v3863_v18 = vld [vmem:[#allocation61_spill] sm:$0xff] }
 0x123   : > { %1535 = vst.msk [vmem:[%s3038_s30 + $0x260] sm:$0xff] %vm1458_vm0, %v1406_v5  ;;  %1536 = vst.msk [vmem:[%s3038_s30 + $0x268] sm:$0xff] %vm1458_vm0, %v1407_v42  ;;  %v1013_v41 = vadd.f32 %v916_v1, %v3854_v54  ;;  %v1014_v51 = vadd.f32 %v916_v1, %v3855_v57  ;;  %v1015_v28 = vadd.f32 %v916_v1, %v2824_v11  ;;  %v1266_v56 = vmul.f32 0.01, %v1010_v49  ;;  %v3864_v54 = vld [vmem:[#allocation62_spill] sm:$0xff]  ;;  %v3865_v57 = vld [vmem:[#allocation63_spill] sm:$0xff] }
 0x124   : > { %1537 = vst.msk [vmem:[%s3038_s30 + $0x270] sm:$0xff] %vm1458_vm0, %v1408_v10  ;;  %1538 = vst.msk [vmem:[%s3038_s30 + $0x278] sm:$0xff] %vm1458_vm0, %v1409_v12  ;;  %v1016_v48 = vadd.f32 %v916_v1, %v3856_v38  ;;  %v1017_v9 = vadd.f32 %v916_v1, %v2832_v26  ;;  %vm1140_vm15 = vcmp.ge.f32.partialorder %v1012_v15, 0.0  ;;  %v1267_v3 = vmul.f32 0.01, %v1011_v60  ;;  %v3860_v1 = vld [vmem:[#allocation58_spill] sm:$0xff] }
 0x125   : > { %vm1141_vm1 = vcmp.ge.f32.partialorder %v1013_v41, 0.0  ;;  %vm1142_vm2 = vcmp.ge.f32.partialorder %v1014_v51, 0.0  ;;  %vm1143_vm3 = vcmp.ge.f32.partialorder %v1015_v28, 0.0  ;;  %v1268_v30 = vmul.f32 0.01, %v1012_v15 }
 0x126   : > { %vm1144_vm4 = vcmp.ge.f32.partialorder %v1016_v48, 0.0  ;;  %vm1145_vm5 = vcmp.ge.f32.partialorder %v1017_v9, 0.0  ;;  %v1034_v11 = vadd.f32 %v928_v23, %v2836_v29  ;;  %v1269_v39 = vmul.f32 0.01, %v1013_v41 }
 0x127   : > { %v1270_v4 = vmul.f32 0.01, %v1014_v51  ;;  %v1271_v26 = vmul.f32 0.01, %v1015_v28  ;;  %v1035_v14 = vadd.f32 %v928_v23, %v3857_v32  ;;  %v1272_v52 = vmul.f32 0.01, %v1016_v48 }
 0x128   : > { %v1273_v8 = vmul.f32 0.01, %v1017_v9  ;;  %v1394_v53 = vsel %vm1138_vm13, %v1010_v49, %v1266_v56  ;;  %v1395_v24 = vsel %vm1139_vm14, %v1011_v60, %v1267_v3  ;;  %v1396_v37 = vsel %vm1140_vm15, %v1012_v15, %v1268_v30  ;;  %v3861_v49 = vld [vmem:[#allocation59_spill] sm:$0xff]  ;;  %v936_v3 = vpop.permute.xlu1 %935 }
 0x129   : > { %v1397_v29 = vsel %vm1141_vm1, %v1013_v41, %v1269_v39  ;;  %v1398_v61 = vsel %vm1142_vm2, %v1014_v51, %v1270_v4  ;;  %v1399_v33 = vsel %vm1143_vm3, %v1015_v28, %v1271_v26  ;;  %1523 = vst.msk [vmem:[%s3038_s30 + $0x200] sm:$0xff] %vm1458_vm0, %v1394_v53  ;;  %1524 = vst.msk [vmem:[%s3038_s30 + $0x208] sm:$0xff] %vm1458_vm0, %v1395_v24  ;;  %vm1162_vm6 = vcmp.ge.f32.partialorder %v1034_v11, 0.0  ;;  %v3866_v28 = vld [vmem:[#allocation64_spill] sm:$0xff]  ;;  %v3869_v4 = vld [vmem:[#allocation3_spill] sm:$0xff] }
 0x12a   : > { %v1400_v0 = vsel %vm1144_vm4, %v1016_v48, %v1272_v52  ;;  %v1401_v36 = vsel %vm1145_vm5, %v1017_v9, %v1273_v8  ;;  %1525 = vst.msk [vmem:[%s3038_s30 + $0x210] sm:$0xff] %vm1458_vm0, %v1396_v37  ;;  %1526 = vst.msk [vmem:[%s3038_s30 + $0x218] sm:$0xff] %vm1458_vm0, %v1397_v29  ;;  %v1036_v50 = vadd.f32 %v928_v23, %v2844_v43  ;;  %vm1163_vm7 = vcmp.ge.f32.partialorder %v1035_v14, 0.0  ;;  %v3867_v48 = vld [vmem:[#allocation2_spill] sm:$0xff] }
 0x12b   : > { %1527 = vst.msk [vmem:[%s3038_s30 + $0x220] sm:$0xff] %vm1458_vm0, %v1398_v61  ;;  %1528 = vst.msk [vmem:[%s3038_s30 + $0x228] sm:$0xff] %vm1458_vm0, %v1399_v33  ;;  %v1037_v40 = vadd.f32 %v928_v23, %v3858_v62  ;;  %v1038_v45 = vadd.f32 %v928_v23, %v2852_v17  ;;  %v1039_v27 = vadd.f32 %v928_v23, %v3859_v16  ;;  %v1290_v43 = vmul.f32 0.01, %v1034_v11  ;;  %v3870_v8 = vld [vmem:[#allocation66_spill] sm:$0xff] }
 0x12c   : > { %1529 = vst.msk [vmem:[%s3038_s30 + $0x230] sm:$0xff] %vm1458_vm0, %v1400_v0  ;;  %1530 = vst.msk [vmem:[%s3038_s30 + $0x238] sm:$0xff] %vm1458_vm0, %v1401_v36  ;;  %v1040_v2 = vadd.f32 %v928_v23, %v2860_v7  ;;  %v1041_v46 = vadd.f32 %v928_v23, %v3860_v1  ;;  %vm1164_vm8 = vcmp.ge.f32.partialorder %v1036_v50, 0.0  ;;  %v1291_v22 = vmul.f32 0.01, %v1035_v14  ;;  %v3868_v23 = vld [vmem:[#allocation65_spill] sm:$0xff] }
 0x12d   : > { %vm1165_vm9 = vcmp.ge.f32.partialorder %v1037_v40, 0.0  ;;  %vm1166_vm10 = vcmp.ge.f32.partialorder %v1038_v45, 0.0  ;;  %vm1167_vm11 = vcmp.ge.f32.partialorder %v1039_v27, 0.0  ;;  %v1292_v17 = vmul.f32 0.01, %v1036_v50  ;;  %v3873_v1 = vld [vmem:[#allocation5_spill] sm:$0xff] }
 0x12e   : > { %vm1168_vm12 = vcmp.ge.f32.partialorder %v1040_v2, 0.0  ;;  %vm1169_vm13 = vcmp.ge.f32.partialorder %v1041_v46, 0.0  ;;  %v1026_v58 = vadd.f32 %v924_v20, %v3861_v49  ;;  %v1293_v19 = vmul.f32 0.01, %v1037_v40  ;;  %v3876_v49 = vld [vmem:[#allocation69_spill] sm:$0xff] }
 0x12f   : > { %v1294_v7 = vmul.f32 0.01, %v1038_v45  ;;  %v1295_v31 = vmul.f32 0.01, %v1039_v27  ;;  %v1027_v60 = vadd.f32 %v924_v20, %v3862_v55  ;;  %v1296_v21 = vmul.f32 0.01, %v1040_v2 }
 0x130   : > { %v1297_v34 = vmul.f32 0.01, %v1041_v46  ;;  %v1418_v35 = vsel %vm1162_vm6, %v1034_v11, %v1290_v43  ;;  %v1419_v44 = vsel %vm1163_vm7, %v1035_v14, %v1291_v22  ;;  %v1420_v6 = vsel %vm1164_vm8, %v1036_v50, %v1292_v17  ;;  %v3875_v22 = vld [vmem:[#allocation6_spill] sm:$0xff] }
 0x131   : > { %v1421_v25 = vsel %vm1165_vm9, %v1037_v40, %v1293_v19  ;;  %v1422_v5 = vsel %vm1166_vm10, %v1038_v45, %v1294_v7  ;;  %v1423_v42 = vsel %vm1167_vm11, %v1039_v27, %v1295_v31  ;;  %1547 = vst.msk [vmem:[%s3038_s30 + $0x2c0] sm:$0xff] %vm1458_vm0, %v1418_v35  ;;  %1548 = vst.msk [vmem:[%s3038_s30 + $0x2c8] sm:$0xff] %vm1458_vm0, %v1419_v44  ;;  %vm1154_vm14 = vcmp.ge.f32.partialorder %v1026_v58, 0.0  ;;  %v3871_v45 = vld [vmem:[#allocation4_spill] sm:$0xff]  ;;  %v3872_v27 = vld [vmem:[#allocation67_spill] sm:$0xff]  ;;  %v932_v19 = vpop.permute.xlu0 %931 }
 0x132   : > { %v1424_v10 = vsel %vm1168_vm12, %v1040_v2, %v1296_v21  ;;  %v1425_v12 = vsel %vm1169_vm13, %v1041_v46, %v1297_v34  ;;  %1549 = vst.msk [vmem:[%s3038_s30 + $0x2d0] sm:$0xff] %vm1458_vm0, %v1420_v6  ;;  %1550 = vst.msk [vmem:[%s3038_s30 + $0x2d8] sm:$0xff] %vm1458_vm0, %v1421_v25  ;;  %v1028_v15 = vadd.f32 %v924_v20, %v3863_v18  ;;  %vm1155_vm15 = vcmp.ge.f32.partialorder %v1027_v60, 0.0  ;;  %v3878_v6 = vld [vmem:[#allocation70_spill] sm:$0xff] }
 0x133   : > { %1551 = vst.msk [vmem:[%s3038_s30 + $0x2e0] sm:$0xff] %vm1458_vm0, %v1422_v5  ;;  %1552 = vst.msk [vmem:[%s3038_s30 + $0x2e8] sm:$0xff] %vm1458_vm0, %v1423_v42  ;;  %v1029_v41 = vadd.f32 %v924_v20, %v3864_v54  ;;  %v1030_v51 = vadd.f32 %v924_v20, %v3865_v57  ;;  %v1031_v38 = vadd.f32 %v924_v20, %v3866_v28  ;;  %v1282_v30 = vmul.f32 0.01, %v1026_v58  ;;  %v3879_v28 = vld [vmem:[#allocation8_spill] sm:$0xff] }
 0x134   : > { %1553 = vst.msk [vmem:[%s3038_s30 + $0x2f0] sm:$0xff] %vm1458_vm0, %v1424_v10  ;;  %1554 = vst.msk [vmem:[%s3038_s30 + $0x2f8] sm:$0xff] %vm1458_vm0, %v1425_v12  ;;  %v1032_v9 = vadd.f32 %v924_v20, %v3867_v48  ;;  %v1033_v56 = vadd.f32 %v924_v20, %v3868_v23  ;;  %vm1156_vm1 = vcmp.ge.f32.partialorder %v1028_v15, 0.0  ;;  %v1283_v11 = vmul.f32 0.01, %v1027_v60  ;;  %v3874_v20 = vld [vmem:[#allocation68_spill] sm:$0xff] }
 0x135   : > { %vm1157_vm2 = vcmp.ge.f32.partialorder %v1029_v41, 0.0  ;;  %vm1158_vm3 = vcmp.ge.f32.partialorder %v1030_v51, 0.0  ;;  %vm1159_vm4 = vcmp.ge.f32.partialorder %v1031_v38, 0.0  ;;  %v1284_v39 = vmul.f32 0.01, %v1028_v15  ;;  %v3880_v48 = vld [vmem:[#allocation71_spill] sm:$0xff] }
 0x136   : > { %vm1160_vm5 = vcmp.ge.f32.partialorder %v1032_v9, 0.0  ;;  %vm1161_vm6 = vcmp.ge.f32.partialorder %v1033_v56, 0.0  ;;  %v1050_v26 = vadd.f32 %v936_v3, %v3869_v4  ;;  %v1285_v32 = vmul.f32 0.01, %v1029_v41  ;;  %v3881_v23 = vld [vmem:[#allocation9_spill] sm:$0xff] }
 0x137   : > { %v1286_v14 = vmul.f32 0.01, %v1030_v51  ;;  %v1287_v52 = vmul.f32 0.01, %v1031_v38  ;;  %v1051_v53 = vadd.f32 %v936_v3, %v3870_v8  ;;  %v1288_v24 = vmul.f32 0.01, %v1032_v9 }
 0x138   : > { %v1289_v37 = vmul.f32 0.01, %v1033_v56  ;;  %v1410_v29 = vsel %vm1154_vm14, %v1026_v58, %v1282_v30  ;;  %v1411_v61 = vsel %vm1155_vm15, %v1027_v60, %v1283_v11  ;;  %v1412_v33 = vsel %vm1156_vm1, %v1028_v15, %v1284_v39  ;;  %v3877_v60 = vld [vmem:[#allocation7_spill] sm:$0xff]  ;;  %v3883_v39 = vld [vmem:[#allocation10_spill] sm:$0xff] }
 0x139   : > { %v1413_v0 = vsel %vm1157_vm2, %v1029_v41, %v1285_v32  ;;  %v1414_v36 = vsel %vm1158_vm3, %v1030_v51, %v1286_v14  ;;  %v1415_v50 = vsel %vm1159_vm4, %v1031_v38, %v1287_v52  ;;  %1539 = vst.msk [vmem:[%s3038_s30 + $0x280] sm:$0xff] %vm1458_vm0, %v1410_v29  ;;  %1540 = vst.msk [vmem:[%s3038_s30 + $0x288] sm:$0xff] %vm1458_vm0, %v1411_v61  ;;  %vm1178_vm7 = vcmp.ge.f32.partialorder %v1050_v26, 0.0  ;;  %v3884_v8 = vld [vmem:[#allocation11_spill] sm:$0xff] }
 0x13a   : > { %v1416_v62 = vsel %vm1160_vm5, %v1032_v9, %v1288_v24  ;;  %v1417_v40 = vsel %vm1161_vm6, %v1033_v56, %v1289_v37  ;;  %1541 = vst.msk [vmem:[%s3038_s30 + $0x290] sm:$0xff] %vm1458_vm0, %v1412_v33  ;;  %1542 = vst.msk [vmem:[%s3038_s30 + $0x298] sm:$0xff] %vm1458_vm0, %v1413_v0  ;;  %v1052_v16 = vadd.f32 %v936_v3, %v3871_v45  ;;  %vm1179_vm8 = vcmp.ge.f32.partialorder %v1051_v53, 0.0 }
 0x13b   : > { %1543 = vst.msk [vmem:[%s3038_s30 + $0x2a0] sm:$0xff] %vm1458_vm0, %v1414_v36  ;;  %1544 = vst.msk [vmem:[%s3038_s30 + $0x2a8] sm:$0xff] %vm1458_vm0, %v1415_v50  ;;  %v1053_v2 = vadd.f32 %v936_v3, %v3872_v27  ;;  %v1054_v46 = vadd.f32 %v936_v3, %v3873_v1  ;;  %v1055_v43 = vadd.f32 %v936_v3, %v3874_v20  ;;  %v1306_v7 = vmul.f32 0.01, %v1050_v26  ;;  %v3885_v27 = vld [vmem:[#allocation12_spill] sm:$0xff]  ;;  %v3886_v1 = vld [vmem:[#allocation73_spill] sm:$0xff] }
 0x13c   : > { %1545 = vst.msk [vmem:[%s3038_s30 + $0x2b0] sm:$0xff] %vm1458_vm0, %v1416_v62  ;;  %1546 = vst.msk [vmem:[%s3038_s30 + $0x2b8] sm:$0xff] %vm1458_vm0, %v1417_v40  ;;  %v1056_v17 = vadd.f32 %v936_v3, %v3875_v22  ;;  %v1057_v58 = vadd.f32 %v936_v3, %v3876_v49  ;;  %vm1180_vm9 = vcmp.ge.f32.partialorder %v1052_v16, 0.0  ;;  %v1307_v31 = vmul.f32 0.01, %v1051_v53  ;;  %v3882_v3 = vld [vmem:[#allocation72_spill] sm:$0xff] }
 0x13d   : > { %vm1181_vm10 = vcmp.ge.f32.partialorder %v1053_v2, 0.0  ;;  %vm1182_vm11 = vcmp.ge.f32.partialorder %v1054_v46, 0.0  ;;  %vm1183_vm12 = vcmp.ge.f32.partialorder %v1055_v43, 0.0  ;;  %v1308_v55 = vmul.f32 0.01, %v1052_v16  ;;  %v3887_v20 = vld [vmem:[#allocation74_spill] sm:$0xff] }
 0x13e   : > { %vm1184_vm13 = vcmp.ge.f32.partialorder %v1056_v17, 0.0  ;;  %vm1185_vm14 = vcmp.ge.f32.partialorder %v1057_v58, 0.0  ;;  %v1042_v21 = vadd.f32 %v932_v19, %v3877_v60  ;;  %v1309_v34 = vmul.f32 0.01, %v1053_v2  ;;  %v3888_v22 = vld [vmem:[#allocation75_spill] sm:$0xff]  ;;  %v3889_v49 = vld [vmem:[#allocation13_spill] sm:$0xff] }
 0x13f   : > { %v1310_v35 = vmul.f32 0.01, %v1054_v46  ;;  %v1311_v44 = vmul.f32 0.01, %v1055_v43  ;;  %v1043_v25 = vadd.f32 %v932_v19, %v3878_v6  ;;  %v1312_v5 = vmul.f32 0.01, %v1056_v17 }
 0x140   : > { %v1313_v42 = vmul.f32 0.01, %v1057_v58  ;;  %v1434_v10 = vsel %vm1178_vm7, %v1050_v26, %v1306_v7  ;;  %v1435_v12 = vsel %vm1179_vm8, %v1051_v53, %v1307_v31  ;;  %v1436_v18 = vsel %vm1180_vm9, %v1052_v16, %v1308_v55  ;;  %v944_v26 = vpop.permute.xlu1 %943  ;;  %v940_v7 = vpop.permute.xlu0 %939 }
 0x141   : > { %v1437_v15 = vsel %vm1181_vm10, %v1053_v2, %v1309_v34  ;;  %v1438_v54 = vsel %vm1182_vm11, %v1054_v46, %v1310_v35  ;;  %v1439_v41 = vsel %vm1183_vm12, %v1055_v43, %v1311_v44  ;;  %1563 = vst.msk [vmem:[%s3038_s30 + $0x340] sm:$0xff] %vm1458_vm0, %v1434_v10  ;;  %1564 = vst.msk [vmem:[%s3038_s30 + $0x348] sm:$0xff] %vm1458_vm0, %v1435_v12  ;;  %vm1170_vm15 = vcmp.ge.f32.partialorder %v1042_v21, 0.0  ;;  %v3890_v44 = vld [vmem:[#allocation76_spill] sm:$0xff] }
 0x142   : > { %v1440_v57 = vsel %vm1184_vm13, %v1056_v17, %v1312_v5  ;;  %v1441_v51 = vsel %vm1185_vm14, %v1057_v58, %v1313_v42  ;;  %1565 = vst.msk [vmem:[%s3038_s30 + $0x350] sm:$0xff] %vm1458_vm0, %v1436_v18  ;;  %1566 = vst.msk [vmem:[%s3038_s30 + $0x358] sm:$0xff] %vm1458_vm0, %v1437_v15  ;;  %v1044_v38 = vadd.f32 %v932_v19, %v3879_v28  ;;  %vm1171_vm1 = vcmp.ge.f32.partialorder %v1043_v25, 0.0  ;;  %v3892_v28 = vld [vmem:[#allocation77_spill] sm:$0xff] }
 0x143   : > { %1567 = vst.msk [vmem:[%s3038_s30 + $0x360] sm:$0xff] %vm1458_vm0, %v1438_v54  ;;  %1568 = vst.msk [vmem:[%s3038_s30 + $0x368] sm:$0xff] %vm1458_vm0, %v1439_v41  ;;  %v1045_v9 = vadd.f32 %v932_v19, %v3880_v48  ;;  %v1046_v56 = vadd.f32 %v932_v19, %v3881_v23  ;;  %v1047_v30 = vadd.f32 %v932_v19, %v3882_v3  ;;  %v1298_v32 = vmul.f32 0.01, %v1042_v21  ;;  %v3893_v48 = vld [vmem:[#allocation78_spill] sm:$0xff]  ;;  %v3894_v23 = vld [vmem:[#allocation79_spill] sm:$0xff] }
 0x144   : > { %1569 = vst.msk [vmem:[%s3038_s30 + $0x370] sm:$0xff] %vm1458_vm0, %v1440_v57  ;;  %1570 = vst.msk [vmem:[%s3038_s30 + $0x378] sm:$0xff] %vm1458_vm0, %v1441_v51  ;;  %v1048_v11 = vadd.f32 %v932_v19, %v2956_v47  ;;  %v1049_v4 = vadd.f32 %v932_v19, %v3883_v39  ;;  %vm1172_vm2 = vcmp.ge.f32.partialorder %v1044_v38, 0.0  ;;  %v1299_v14 = vmul.f32 0.01, %v1043_v25  ;;  %v3891_v57 = vld [vmem:[#allocation14_spill] sm:$0xff] }
 0x145   : > { %vm1173_vm3 = vcmp.ge.f32.partialorder %v1045_v9, 0.0  ;;  %vm1174_vm4 = vcmp.ge.f32.partialorder %v1046_v56, 0.0  ;;  %vm1175_vm5 = vcmp.ge.f32.partialorder %v1047_v30, 0.0  ;;  %v1300_v52 = vmul.f32 0.01, %v1044_v38  ;;  %v3895_v3 = vld [vmem:[#allocation80_spill] sm:$0xff] }
 0x146   : > { %vm1176_vm6 = vcmp.ge.f32.partialorder %v1048_v11, 0.0  ;;  %vm1177_vm7 = vcmp.ge.f32.partialorder %v1049_v4, 0.0  ;;  %v1066_v53 = vadd.f32 %v944_v26, %v3884_v8  ;;  %v1301_v24 = vmul.f32 0.01, %v1045_v9 }
 0x147   : > { %v1302_v47 = vmul.f32 0.01, %v1046_v56  ;;  %v1303_v37 = vmul.f32 0.01, %v1047_v30  ;;  %v1067_v29 = vadd.f32 %v944_v26, %v2968_v59  ;;  %v1304_v61 = vmul.f32 0.01, %v1048_v11 }
 0x148   : > { %v1305_v33 = vmul.f32 0.01, %v1049_v4  ;;  %v1426_v0 = vsel %vm1170_vm15, %v1042_v21, %v1298_v32  ;;  %v1427_v36 = vsel %vm1171_vm1, %v1043_v25, %v1299_v14  ;;  %v1428_v50 = vsel %vm1172_vm2, %v1044_v38, %v1300_v52 }
 0x149   : > { %v1429_v62 = vsel %vm1173_vm3, %v1045_v9, %v1301_v24  ;;  %v1430_v40 = vsel %vm1174_vm4, %v1046_v56, %v1302_v47  ;;  %v1431_v45 = vsel %vm1175_vm5, %v1047_v30, %v1303_v37  ;;  %1555 = vst.msk [vmem:[%s3038_s30 + $0x300] sm:$0xff] %vm1458_vm0, %v1426_v0  ;;  %1556 = vst.msk [vmem:[%s3038_s30 + $0x308] sm:$0xff] %vm1458_vm0, %v1427_v36  ;;  %vm1194_vm8 = vcmp.ge.f32.partialorder %v1066_v53, 0.0 }
 0x14a   : > { %v1432_v59 = vsel %vm1176_vm6, %v1048_v11, %v1304_v61  ;;  %v1433_v16 = vsel %vm1177_vm7, %v1049_v4, %v1305_v33  ;;  %1557 = vst.msk [vmem:[%s3038_s30 + $0x310] sm:$0xff] %vm1458_vm0, %v1428_v50  ;;  %1558 = vst.msk [vmem:[%s3038_s30 + $0x318] sm:$0xff] %vm1458_vm0, %v1429_v62  ;;  %v1068_v2 = vadd.f32 %v944_v26, %v3885_v27  ;;  %vm1195_vm9 = vcmp.ge.f32.partialorder %v1067_v29, 0.0  ;;  %v3896_v11 = vld [vmem:[#allocation81_spill] sm:$0xff] }
 0x14b   : > { %1559 = vst.msk [vmem:[%s3038_s30 + $0x320] sm:$0xff] %vm1458_vm0, %v1430_v40  ;;  %1560 = vst.msk [vmem:[%s3038_s30 + $0x328] sm:$0xff] %vm1458_vm0, %v1431_v45  ;;  %v1069_v46 = vadd.f32 %v944_v26, %v3886_v1  ;;  %v1070_v43 = vadd.f32 %v944_v26, %v3887_v20  ;;  %v1071_v17 = vadd.f32 %v944_v26, %v3888_v22  ;;  %v1322_v31 = vmul.f32 0.01, %v1066_v53 }
 0x14c   : > { %1561 = vst.msk [vmem:[%s3038_s30 + $0x330] sm:$0xff] %vm1458_vm0, %v1432_v59  ;;  %1562 = vst.msk [vmem:[%s3038_s30 + $0x338] sm:$0xff] %vm1458_vm0, %v1433_v16  ;;  %v1072_v58 = vadd.f32 %v944_v26, %v3889_v49  ;;  %v1073_v19 = vadd.f32 %v944_v26, %v2992_v13  ;;  %vm1196_vm10 = vcmp.ge.f32.partialorder %v1068_v2, 0.0  ;;  %v1323_v55 = vmul.f32 0.01, %v1067_v29 }
 0x14d   : > { %vm1197_vm11 = vcmp.ge.f32.partialorder %v1069_v46, 0.0  ;;  %vm1198_vm12 = vcmp.ge.f32.partialorder %v1070_v43, 0.0  ;;  %vm1199_vm13 = vcmp.ge.f32.partialorder %v1071_v17, 0.0  ;;  %v1324_v60 = vmul.f32 0.01, %v1068_v2 }
 0x14e   : > { %vm1200_vm14 = vcmp.ge.f32.partialorder %v1072_v58, 0.0  ;;  %vm1201_vm15 = vcmp.ge.f32.partialorder %v1073_v19, 0.0  ;;  %v1058_v21 = vadd.f32 %v940_v7, %v2996_v63  ;;  %v1325_v34 = vmul.f32 0.01, %v1069_v46 }
 0x14f   : > { %v1326_v35 = vmul.f32 0.01, %v1070_v43  ;;  %v1327_v13 = vmul.f32 0.01, %v1071_v17  ;;  %v1059_v6 = vadd.f32 %v940_v7, %v3890_v44  ;;  %v1328_v25 = vmul.f32 0.01, %v1072_v58 }
 0x150   : > { %v1329_v5 = vmul.f32 0.01, %v1073_v19  ;;  %v1450_v42 = vsel %vm1194_vm8, %v1066_v53, %v1322_v31  ;;  %v1451_v10 = vsel %vm1195_vm9, %v1067_v29, %v1323_v55  ;;  %v1452_v12 = vsel %vm1196_vm10, %v1068_v2, %v1324_v60 }
 0x151   : > { %v1453_v63 = vsel %vm1197_vm11, %v1069_v46, %v1325_v34  ;;  %v1454_v18 = vsel %vm1198_vm12, %v1070_v43, %v1326_v35  ;;  %v1455_v15 = vsel %vm1199_vm13, %v1071_v17, %v1327_v13  ;;  %1579 = vst.msk [vmem:[%s3038_s30 + $0x3c0] sm:$0xff] %vm1458_vm0, %v1450_v42  ;;  %1580 = vst.msk [vmem:[%s3038_s30 + $0x3c8] sm:$0xff] %vm1458_vm0, %v1451_v10  ;;  %vm1186_vm1 = vcmp.ge.f32.partialorder %v1058_v21, 0.0 }
 0x152   : > { %v1456_v54 = vsel %vm1200_vm14, %v1072_v58, %v1328_v25  ;;  %v1457_v41 = vsel %vm1201_vm15, %v1073_v19, %v1329_v5  ;;  %1581 = vst.msk [vmem:[%s3038_s30 + $0x3d0] sm:$0xff] %vm1458_vm0, %v1452_v12  ;;  %1582 = vst.msk [vmem:[%s3038_s30 + $0x3d8] sm:$0xff] %vm1458_vm0, %v1453_v63  ;;  %v1060_v51 = vadd.f32 %v940_v7, %v3891_v57  ;;  %vm1187_vm2 = vcmp.ge.f32.partialorder %v1059_v6, 0.0 }
 0x153   : > { %1583 = vst.msk [vmem:[%s3038_s30 + $0x3e0] sm:$0xff] %vm1458_vm0, %v1454_v18  ;;  %1584 = vst.msk [vmem:[%s3038_s30 + $0x3e8] sm:$0xff] %vm1458_vm0, %v1455_v15  ;;  %v1061_v38 = vadd.f32 %v940_v7, %v3892_v28  ;;  %v1062_v9 = vadd.f32 %v940_v7, %v3893_v48  ;;  %v1063_v56 = vadd.f32 %v940_v7, %v3894_v23  ;;  %v1314_v4 = vmul.f32 0.01, %v1058_v21 }
 0x154   : > { %1585 = vst.msk [vmem:[%s3038_s30 + $0x3f0] sm:$0xff] %vm1458_vm0, %v1456_v54  ;;  %1586 = vst.msk [vmem:[%s3038_s30 + $0x3f8] sm:$0xff] %vm1458_vm0, %v1457_v41  ;;  %v1064_v30 = vadd.f32 %v940_v7, %v3895_v3  ;;  %v1065_v39 = vadd.f32 %v940_v7, %v3896_v11  ;;  %vm1188_vm3 = vcmp.ge.f32.partialorder %v1060_v51, 0.0  ;;  %v1315_v26 = vmul.f32 0.01, %v1059_v6 }
 0x155   : > { %vm1189_vm4 = vcmp.ge.f32.partialorder %v1061_v38, 0.0  ;;  %vm1190_vm5 = vcmp.ge.f32.partialorder %v1062_v9, 0.0  ;;  %vm1191_vm6 = vcmp.ge.f32.partialorder %v1063_v56, 0.0  ;;  %v1316_v32 = vmul.f32 0.01, %v1060_v51 }
 0x156   : > { %vm1192_vm7 = vcmp.ge.f32.partialorder %v1064_v30, 0.0  ;;  %vm1193_vm8 = vcmp.ge.f32.partialorder %v1065_v39, 0.0  ;;  %v1317_v14 = vmul.f32 0.01, %v1061_v38  ;;  %v1318_v52 = vmul.f32 0.01, %v1062_v9 }
 0x157   : > { %v1319_v8 = vmul.f32 0.01, %v1063_v56  ;;  %v1320_v53 = vmul.f32 0.01, %v1064_v30  ;;  %v1321_v24 = vmul.f32 0.01, %v1065_v39  ;;  %v1442_v47 = vsel %vm1186_vm1, %v1058_v21, %v1314_v4 }
 0x158   : > { %v1443_v37 = vsel %vm1187_vm2, %v1059_v6, %v1315_v26  ;;  %v1444_v29 = vsel %vm1188_vm3, %v1060_v51, %v1316_v32  ;;  %v1445_v61 = vsel %vm1189_vm4, %v1061_v38, %v1317_v14  ;;  %v1446_v33 = vsel %vm1190_vm5, %v1062_v9, %v1318_v52  ;;  %1571 = vst.msk [vmem:[%s3038_s30 + $0x380] sm:$0xff] %vm1458_vm0, %v1442_v47 }
 0x159   : > { %v1447_v0 = vsel %vm1191_vm6, %v1063_v56, %v1319_v8  ;;  %1572 = vst.msk [vmem:[%s3038_s30 + $0x388] sm:$0xff] %vm1458_vm0, %v1443_v37  ;;  %v1448_v36 = vsel %vm1192_vm7, %v1064_v30, %v1320_v53  ;;  %v1449_v50 = vsel %vm1193_vm8, %v1065_v39, %v1321_v24  ;;  %1573 = vst.msk [vmem:[%s3038_s30 + $0x390] sm:$0xff] %vm1458_vm0, %v1444_v29 }
 0x15a   : > { %1574 = vst.msk [vmem:[%s3038_s30 + $0x398] sm:$0xff] %vm1458_vm0, %v1445_v61  ;;  %1575 = vst.msk [vmem:[%s3038_s30 + $0x3a0] sm:$0xff] %vm1458_vm0, %v1446_v33 }
 0x15b   : > { %1576 = vst.msk [vmem:[%s3038_s30 + $0x3a8] sm:$0xff] %vm1458_vm0, %v1447_v0  ;;  %1577 = vst.msk [vmem:[%s3038_s30 + $0x3b0] sm:$0xff] %vm1458_vm0, %v1448_v36 }
 0x15c   : > { %1578 = vst.msk [vmem:[%s3038_s30 + $0x3b8] sm:$0xff] %vm1458_vm0, %v1449_v50 }
 0x15d PF: > { %s13_s14 = sadd.s32 1, %s2116_s14   ;;  %s3897_s12 = smov %s2112_s13 }
 0x15e   : > { %p10_p5 = scmp.ge.s32.totalorder %s13_s14, 4   ;;  %s3898_s13 = smov %s3900_s15 }
 0x160   :  { %12 = sbr.rel (!%p10_p5) target bundleno = 2 (0x2), region = 68 }

</bundles_post_ra>
